<compile_context>
chip_gen: v5e
topology: v5e:2x2
jax: 0.10.0
libtpu: 0.0.40
codegen_flags: <defaults>
</compile_context>

<pallas_src>
import math
import functools

import numpy as np
import jax
import jax.numpy as jnp
from jax import lax
from jax.experimental import pallas as pl
from jax.experimental.pallas import tpu as pltpu


# ----------------------------- kernel helpers ------------------------------

def _silu(x):
    return x * jax.nn.sigmoid(x)


def _group_norm(x, gmat2, S, St, gamma, beta, eps):
    """GroupNorm on a packed (C, L) slab, L = Bblk*HW, per-sample statistics.

    gmat2: (2C, 2C) block-diag group-averaging matrix (1/(cg*HW) folded in).
    S:     (L, Bblk) lane->sample indicator;  St = S^T (Bblk, L).
    gamma, beta: (C, 1) columns.  One-pass variance E[x^2] - mean^2, f32 stats.
    """
    C = x.shape[0]
    stk = jnp.concatenate([x, x * x], axis=0)                          # (2C, L)
    sums = jnp.dot(stk, S, preferred_element_type=jnp.float32)         # (2C, Bblk)
    g = jnp.dot(gmat2, sums, preferred_element_type=jnp.float32)       # (2C, Bblk)
    mean, ex2 = g[:C], g[C:]
    var = ex2 - mean * mean
    inv = lax.rsqrt(var + eps)
    mi = jnp.concatenate([mean * inv, inv], axis=0)                    # (2C, Bblk)
    back = jnp.dot(mi, St, preferred_element_type=jnp.float32)         # (2C, L)
    # (x - mean) * inv == x*inv - mean*inv
    return (x * back[C:] - back[:C]) * gamma + beta


def _conv3x3(h, w_flat, bias, masks, W, L, matmul_dtype, accum_taps):
    """3x3 conv (padding=1) on a packed (C, L) slab.

    Each tap is a circular lane shift (pltpu.roll, XLU) of the whole slab,
    multiplied by a precomputed boundary mask (which also zeroes every lane
    rolled in from the neighboring packed sample).

    slab path  : stack 9 taps (cast to matmul_dtype per-tap) -> ONE K=9C matmul
    taps path  : 9 per-tap accumulating matmuls, no (9C, L) slab (large C / v7x)

    h:      (C, L) float32;   w_flat: (Cout, 9*C) in matmul_dtype, K=(dh,dw,ci)
    bias:   (Cout, 1) or (Cout, L);   masks: list of 9 (1, L) f32 masks
    """
    C = h.shape[0]
    if accum_taps:
        acc = None
        k = 0
        for dh in range(3):
            for dw in range(3):
                dy, dx = dh - 1, dw - 1
                shift = (-(dy * W + dx)) % L       # out[p] = h[p + dy*W + dx]
                t = pltpu.roll(h, shift=shift, axis=1) if shift else h
                if dy or dx:
                    t = t * masks[k]
                t = t.astype(matmul_dtype)
                wk = w_flat[:, k * C:(k + 1) * C]                      # (Cout, C)
                p = jnp.dot(wk, t, preferred_element_type=jnp.float32)
                acc = p if acc is None else acc + p
                k += 1
        return acc + bias

    taps = []
    k = 0
    for dh in range(3):
        for dw in range(3):
            dy, dx = dh - 1, dw - 1
            shift = (-(dy * W + dx)) % L
            t = pltpu.roll(h, shift=shift, axis=1) if shift else h
            if dy or dx:
                t = t * masks[k]
            taps.append(t.astype(matmul_dtype))    # cast BEFORE concat
            k += 1
    slab = jnp.concatenate(taps, axis=0)                               # (9C, L)
    return jnp.dot(w_flat, slab, preferred_element_type=jnp.float32) + bias


# --------------------------------- kernel ----------------------------------

def resblock_kernel(x_ref, t_ref, mask_ref, s_ref, st_ref,
                    gm1_ref, g1_ref, be1_ref, w1_ref,
                    gm2_ref, g2_ref, be2_ref, w2_ref, b2_ref,
                    ws_ref, bs_ref,
                    out_ref,
                    *, W, eps, matmul_dtype, accum_taps):
    L = out_ref.shape[-1]                                  # Bblk * H * W lanes
    x = x_ref[...]                                         # (Cin, L) f32

    m = mask_ref[...]                                      # (9, L) f32
    masks = [m[k:k + 1, :] for k in range(9)]
    S, St = s_ref[...], st_ref[...]

    # norm1 + swish
    h = _silu(_group_norm(x, gm1_ref[...], S, St, g1_ref[...], be1_ref[...], eps))

    # TODO(synk): resample ('up' nearest-Upsample / 'down' AvgPool2d) and
    # use_affine_time branches are not implemented (resample=None config only).

    # conv1 (3x3, padding=1); bias = b1 + Linear(silu(time)) folded in wrapper
    h = _conv3x3(h, w1_ref[...], t_ref[...], masks, W, L, matmul_dtype, accum_taps)

    # norm2 + swish  (dropout has p=0 -> identity)
    h = _silu(_group_norm(h, gm2_ref[...], S, St, g2_ref[...], be2_ref[...], eps))

    # conv2 (3x3, padding=1)
    h = _conv3x3(h, w2_ref[...], b2_ref[...], masks, W, L, matmul_dtype, accum_taps)

    # skip (1x1 conv since in_channel != out_channel)
    skip = jnp.dot(ws_ref[...], x.astype(matmul_dtype),
                   preferred_element_type=jnp.float32) + bs_ref[...]

    out_ref[...] = (h + skip).astype(out_ref.dtype)


# -------------------------------- wrapper -----------------------------------

def resblock_forward(x_nchw, time_emb, p, *, groups,
                     batch_block=None,
                     matmul_dtype=jnp.bfloat16,     # bf16 MXU-native on v5e/v6e/v7x
                     out_dtype=jnp.float32,
                     conv_taps=None,
                     vmem_limit_bytes=None,
                     eps=1e-5):
    B, Cin, H, W = x_nchw.shape
    HW = H * W
    Cout = p["w1"].shape[-1]

    Bblk = B if batch_block is None else batch_block
    assert B % Bblk == 0, "batch_block must divide batch"
    L = Bblk * HW
    assert (L % 128 == 0) or (Bblk == B), "packed lane count must be lane-aligned"

    # Auto: drop the (9C, L) slab for large working sets (per-tap accumulation).
    if conv_taps is None:
        conv_taps = 9 * max(Cin, Cout) * L * jnp.dtype(matmul_dtype).itemsize > (8 << 20)

    # Channel-major packing: (B, C, H, W) -> (C, B*HW).  One XLA transpose;
    # done here so the kernel's lanes are sample-major and fully dense.
    x_cm = jnp.transpose(x_nchw.reshape(B, Cin, HW).astype(jnp.float32),
                         (1, 0, 2)).reshape(Cin, B * HW)

    # Time MLP hoisted + conv1 bias folded: per-(sample, channel) bias column,
    # broadcast over lanes in XLA and sliced per grid step.
    tvec = (jax.nn.silu(time_emb.astype(jnp.float32))
            @ p["tw"].astype(jnp.float32)
            + p["tb"].astype(jnp.float32)
            + p["b1"].astype(jnp.float32))                              # (B, Cout)
    tlane = jnp.broadcast_to(tvec.T[:, :, None],
                             (Cout, B, HW)).reshape(Cout, B * HW)

    # 3x3-conv boundary masks (valid-position indicators), tiled across the
    # packed samples -> they also kill taps rolled in from a neighboring sample.
    hh = np.arange(HW) // W
    ww = np.arange(HW) % W
    masks1 = np.stack([
        ((hh + dy >= 0) & (hh + dy < H) & (ww + dx >= 0) & (ww + dx < W))
        for dy in (-1, 0, 1) for dx in (-1, 0, 1)
    ]).astype(np.float32)                                               # (9, HW)
    masks = np.tile(masks1, (1, Bblk))                                  # (9, L)

    # Per-sample lane-sum matrices for GroupNorm statistics.
    lane_sample = np.arange(L) // HW
    S = (lane_sample[:, None] == np.arange(Bblk)[None, :]).astype(np.float32)
    St = S.T

    def col(v):
        return v.reshape(-1, 1).astype(jnp.float32)

    def gmat2(C):  # block-diag group-averaging matrix (1/(cg*HW) folded in)
        cg = C // groups
        gid = np.arange(C) // cg
        g = (gid[:, None] == gid[None, :]).astype(np.float32) / (cg * HW)
        z = np.zeros_like(g)
        return jnp.asarray(np.block([[g, z], [z, g]]))

    # Conv weights flattened to (Cout, 9*Cin), K ordered (dh, dw, ci), matching
    # the tap stacking order in the kernel; pre-cast to matmul_dtype (no per-step
    # casts, half the resident weight VMEM for bf16).
    w1f = jnp.asarray(np.asarray(p["w1"]).reshape(9 * Cin, Cout).T, dtype=matmul_dtype)
    w2f = jnp.asarray(np.asarray(p["w2"]).reshape(9 * Cout, Cout).T, dtype=matmul_dtype)
    wsT = jnp.asarray(np.asarray(p["ws"]).T, dtype=matmul_dtype)

    consts = [
        jnp.asarray(masks), jnp.asarray(S), jnp.asarray(St),
        gmat2(Cin), col(p["g1"]), col(p["be1"]), w1f,
        gmat2(Cout), col(p["g2"]), col(p["be2"]), w2f, col(p["b2"]),
        wsT, col(p["bs"]),
    ]

    in_specs = (
        [pl.BlockSpec((Cin, L), lambda b: (0, b)),      # x, lane block per step
         pl.BlockSpec((Cout, L), lambda b: (0, b))]     # fused conv1/time bias
        + [pl.BlockSpec(a.shape, lambda b: (0, 0)) for a in consts]
    )

    cp_kwargs = dict(dimension_semantics=("parallel",))
    if vmem_limit_bytes is not None:
        cp_kwargs["vmem_limit_bytes"] = vmem_limit_bytes

    out = pl.pallas_call(
        functools.partial(resblock_kernel, W=W, eps=eps,
                          matmul_dtype=matmul_dtype, accum_taps=conv_taps),
        out_shape=jax.ShapeDtypeStruct((Cout, B * HW), out_dtype),
        grid_spec=pltpu.PrefetchScalarGridSpec(
            num_scalar_prefetch=0,
            grid=(B // Bblk,),
            in_specs=in_specs,
            out_specs=pl.BlockSpec((Cout, L), lambda b: (0, b)),
        ),
        compiler_params=pltpu.CompilerParams(**cp_kwargs),
    )(x_cm, tlane, *consts)

    # (Cout, B*HW) -> NCHW
    return jnp.transpose(out.reshape(Cout, B, HW), (1, 0, 2)).reshape(B, Cout, H, W)


# -------------------------- deterministic init -------------------------------

def _vs_uniform(key, shape, fan_in, fan_out, scale=1.0):
    bound = math.sqrt(3.0 * scale / ((fan_in + fan_out) / 2.0))
    return jax.random.uniform(key, shape, jnp.float32, -bound, bound)


def init_params(key, in_ch, out_ch, time_dim):
    ks = jax.random.split(key, 4)
    # NOTE: the PyTorch module initializes conv2 / time with scale=1e-10;
    # scale=1.0 is used here so every compute path is exercised numerically.
    return {
        "g1": jnp.ones((in_ch,), jnp.float32),
        "be1": jnp.zeros((in_ch,), jnp.float32),
        "w1": _vs_uniform(ks[0], (3, 3, in_ch, out_ch), 9 * in_ch, 9 * out_ch),
        "b1": jnp.zeros((out_ch,), jnp.float32),
        "tw": _vs_uniform(ks[1], (time_dim, out_ch), time_dim, out_ch),
        "tb": jnp.zeros((out_ch,), jnp.float32),
        "g2": jnp.ones((out_ch,), jnp.float32),
        "be2": jnp.zeros((out_ch,), jnp.float32),
        "w2": _vs_uniform(ks[2], (3, 3, out_ch, out_ch), 9 * out_ch, 9 * out_ch),
        "b2": jnp.zeros((out_ch,), jnp.float32),
        "ws": _vs_uniform(ks[3], (in_ch, out_ch), in_ch, out_ch),
        "bs": jnp.zeros((out_ch,), jnp.float32),
    }


# ------------------------------ pure-JAX reference ---------------------------

def reference_forward(x_nchw, t, p, groups, eps=1e-5):
    def gn(x, gamma, beta):
        B, C, H, W = x.shape
        xr = x.reshape(B, groups, C // groups, H, W)
        mean = xr.mean(axis=(2, 3, 4), keepdims=True)
        var = xr.var(axis=(2, 3, 4), keepdims=True)
        xn = ((xr - mean) / jnp.sqrt(var + eps)).reshape(B, C, H, W)
        return xn * gamma[None, :, None, None] + beta[None, :, None, None]

    def conv(x, w_hwio, b, pad):
        y = lax.conv_general_dilated(x, w_hwio, (1, 1), [(pad, pad), (pad, pad)],
                                     dimension_numbers=("NCHW", "HWIO", "NCHW"))
        return y + b[None, :, None, None]

    h = jax.nn.silu(gn(x_nchw, p["g1"], p["be1"]))
    h = conv(h, p["w1"], p["b1"], 1)
    tb = jax.nn.silu(t) @ p["tw"] + p["tb"]
    h = h + tb[:, :, None, None]
    h = jax.nn.silu(gn(h, p["g2"], p["be2"]))
    h = conv(h, p["w2"], p["b2"], 1)
    cin, cout = p["ws"].shape
    skip = conv(x_nchw, p["ws"].reshape(1, 1, cin, cout), p["bs"], 0)
    return h + skip


# ----------------------------------- main ------------------------------------

if __name__ == "__main__":
    B, Cin, Cout, H, W = 4, 8, 16, 16, 16
    Tdim, GROUPS = 32, 4

    key = jax.random.PRNGKey(0)
    kx, kt, kp = jax.random.split(key, 3)
    x = jax.random.normal(kx, (B, Cin, H, W), jnp.float32)       # NCHW like PyTorch
    time_emb = jax.random.normal(kt, (B, Tdim), jnp.float32)
    params = init_params(kp, Cin, Cout, Tdim)

    ref = jax.block_until_ready(reference_forward(x, time_emb, params, GROUPS))

    # f32 matmul path, single-slab conv, 2 samples packed per grid step.
    out = jax.block_until_ready(
        resblock_forward(x, time_emb, params, groups=GROUPS,
                         batch_block=2, matmul_dtype=jnp.float32))
    assert out.shape == (B, Cout, H, W)
    assert jnp.allclose(out, ref, rtol=1e-4, atol=2e-4), (
        float(jnp.max(jnp.abs(out - ref))))

    # f32, per-tap accumulating-matmul conv path (no (9C, L) slab).
    out_taps = jax.block_until_ready(
        resblock_forward(x, time_emb, params, groups=GROUPS,
                         batch_block=2, matmul_dtype=jnp.float32, conv_taps=True))
    assert jnp.allclose(out_taps, ref, rtol=1e-4, atol=2e-4), (
        float(jnp.max(jnp.abs(out_taps - ref))))

    # Default bf16 MXU-operand path (all chip generations); GN stats and
    # elementwise stay f32 -> looser tolerance.
    out_bf16 = jax.block_until_ready(
        resblock_forward(x, time_emb, params, groups=GROUPS, batch_block=2))
    assert float(jnp.max(jnp.abs(out_bf16 - ref))) < 0.3

    print("KERNEL_OK")
</pallas_src>

<mosaic_0001>
module attributes {stable_mosaic.version = 11 : i64} {
  func.func @resblock_kernel(%arg0: i32, %arg1: memref<8x512xf32, #tpu.memory_space<vmem>>, %arg2: memref<16x512xf32, #tpu.memory_space<vmem>>, %arg3: memref<9x512xf32, #tpu.memory_space<vmem>>, %arg4: memref<512x2xf32, #tpu.memory_space<vmem>>, %arg5: memref<2x512xf32, #tpu.memory_space<vmem>>, %arg6: memref<16x16xf32, #tpu.memory_space<vmem>>, %arg7: memref<8x1xf32, #tpu.memory_space<vmem>>, %arg8: memref<8x1xf32, #tpu.memory_space<vmem>>, %arg9: memref<16x72xf32, #tpu.memory_space<vmem>>, %arg10: memref<32x32xf32, #tpu.memory_space<vmem>>, %arg11: memref<16x1xf32, #tpu.memory_space<vmem>>, %arg12: memref<16x1xf32, #tpu.memory_space<vmem>>, %arg13: memref<16x144xf32, #tpu.memory_space<vmem>>, %arg14: memref<16x1xf32, #tpu.memory_space<vmem>>, %arg15: memref<16x8xf32, #tpu.memory_space<vmem>>, %arg16: memref<16x1xf32, #tpu.memory_space<vmem>>, %arg17: memref<16x512xf32, #tpu.memory_space<vmem>>) attributes {dimension_semantics = [#tpu.dimension_semantics<parallel>], iteration_bounds = array<i64: 2>, scalar_prefetch = 0 : i64, scratch_operands = 0 : i64, tpu.core_type = #tpu.core_type<tc>, window_params = [{transform_indices = @transform_0, window_bounds = array<i64: 8, 512>}, {transform_indices = @transform_1, window_bounds = array<i64: 16, 512>}, {pipeline_mode = #tpu.pipeline_mode<synchronous>, transform_indices = @transform_2, window_bounds = array<i64: 9, 512>}, {pipeline_mode = #tpu.pipeline_mode<synchronous>, transform_indices = @transform_3, window_bounds = array<i64: 512, 2>}, {pipeline_mode = #tpu.pipeline_mode<synchronous>, transform_indices = @transform_4, window_bounds = array<i64: 2, 512>}, {pipeline_mode = #tpu.pipeline_mode<synchronous>, transform_indices = @transform_5, window_bounds = array<i64: 16, 16>}, {pipeline_mode = #tpu.pipeline_mode<synchronous>, transform_indices = @transform_6, window_bounds = array<i64: 8, 1>}, {pipeline_mode = #tpu.pipeline_mode<synchronous>, transform_indices = @transform_7, window_bounds = array<i64: 8, 1>}, {pipeline_mode = #tpu.pipeline_mode<synchronous>, transform_indices = @transform_8, window_bounds = array<i64: 16, 72>}, {pipeline_mode = #tpu.pipeline_mode<synchronous>, transform_indices = @transform_9, window_bounds = array<i64: 32, 32>}, {pipeline_mode = #tpu.pipeline_mode<synchronous>, transform_indices = @transform_10, window_bounds = array<i64: 16, 1>}, {pipeline_mode = #tpu.pipeline_mode<synchronous>, transform_indices = @transform_11, window_bounds = array<i64: 16, 1>}, {pipeline_mode = #tpu.pipeline_mode<synchronous>, transform_indices = @transform_12, window_bounds = array<i64: 16, 144>}, {pipeline_mode = #tpu.pipeline_mode<synchronous>, transform_indices = @transform_13, window_bounds = array<i64: 16, 1>}, {pipeline_mode = #tpu.pipeline_mode<synchronous>, transform_indices = @transform_14, window_bounds = array<i64: 16, 8>}, {pipeline_mode = #tpu.pipeline_mode<synchronous>, transform_indices = @transform_15, window_bounds = array<i64: 16, 1>}, {transform_indices = @transform_16, window_bounds = array<i64: 16, 512>}]} {
    %c0 = arith.constant 0 : index
    %c0_0 = arith.constant 0 : index
    %0 = vector.load %arg1[%c0, %c0_0] : memref<8x512xf32, #tpu.memory_space<vmem>>, vector<8x512xf32>
    %c0_1 = arith.constant 0 : index
    %c0_2 = arith.constant 0 : index
    %1 = vector.load %arg3[%c0_1, %c0_2] : memref<9x512xf32, #tpu.memory_space<vmem>>, vector<9x512xf32>
    %2 = vector.extract_strided_slice %1 {offsets = [0, 0], sizes = [1, 512], strides = [1, 1]} : vector<9x512xf32> to vector<1x512xf32>
    %3 = vector.extract_strided_slice %1 {offsets = [1, 0], sizes = [1, 512], strides = [1, 1]} : vector<9x512xf32> to vector<1x512xf32>
    %4 = vector.extract_strided_slice %1 {offsets = [2, 0], sizes = [1, 512], strides = [1, 1]} : vector<9x512xf32> to vector<1x512xf32>
    %5 = vector.extract_strided_slice %1 {offsets = [3, 0], sizes = [1, 512], strides = [1, 1]} : vector<9x512xf32> to vector<1x512xf32>
    %6 = vector.extract_strided_slice %1 {offsets = [5, 0], sizes = [1, 512], strides = [1, 1]} : vector<9x512xf32> to vector<1x512xf32>
    %7 = vector.extract_strided_slice %1 {offsets = [6, 0], sizes = [1, 512], strides = [1, 1]} : vector<9x512xf32> to vector<1x512xf32>
    %8 = vector.extract_strided_slice %1 {offsets = [7, 0], sizes = [1, 512], strides = [1, 1]} : vector<9x512xf32> to vector<1x512xf32>
    %9 = vector.extract_strided_slice %1 {offsets = [8, 0], sizes = [1, 512], strides = [1, 1]} : vector<9x512xf32> to vector<1x512xf32>
    %c0_3 = arith.constant 0 : index
    %c0_4 = arith.constant 0 : index
    %10 = vector.load %arg4[%c0_3, %c0_4] : memref<512x2xf32, #tpu.memory_space<vmem>>, vector<512x2xf32>
    %c0_5 = arith.constant 0 : index
    %c0_6 = arith.constant 0 : index
    %11 = vector.load %arg5[%c0_5, %c0_6] : memref<2x512xf32, #tpu.memory_space<vmem>>, vector<2x512xf32>
    %c0_7 = arith.constant 0 : index
    %c0_8 = arith.constant 0 : index
    %12 = vector.load %arg6[%c0_7, %c0_8] : memref<16x16xf32, #tpu.memory_space<vmem>>, vector<16x16xf32>
    %c0_9 = arith.constant 0 : index
    %c0_10 = arith.constant 0 : index
    %13 = vector.load %arg7[%c0_9, %c0_10] : memref<8x1xf32, #tpu.memory_space<vmem>>, vector<8x1xf32>
    %c0_11 = arith.constant 0 : index
    %c0_12 = arith.constant 0 : index
    %14 = vector.load %arg8[%c0_11, %c0_12] : memref<8x1xf32, #tpu.memory_space<vmem>>, vector<8x1xf32>
    %15 = arith.mulf %0, %0 : vector<8x512xf32>
    %16 = tpu.concatenate %0, %15 in 0 : vector<8x512xf32>, vector<8x512xf32> -> vector<16x512xf32>
    %cst = arith.constant dense<0.000000e+00> : vector<16x2xf32>
    %17 = tpu.matmul %16, %10, %cst {dimension_numbers = #tpu.dot_dimension_numbers<[1], [0], [0], [1], [0, 0, 1, 1], [], []>} : vector<16x512xf32>, vector<512x2xf32>, vector<16x2xf32> -> vector<16x2xf32>
    %cst_13 = arith.constant dense<0.000000e+00> : vector<16x2xf32>
    %18 = tpu.matmul %12, %17, %cst_13 {dimension_numbers = #tpu.dot_dimension_numbers<[1], [0], [0], [1], [0, 0, 1, 1], [], []>} : vector<16x16xf32>, vector<16x2xf32>, vector<16x2xf32> -> vector<16x2xf32>
    %19 = vector.extract_strided_slice %18 {offsets = [0, 0], sizes = [8, 2], strides = [1, 1]} : vector<16x2xf32> to vector<8x2xf32>
    %20 = vector.extract_strided_slice %18 {offsets = [8, 0], sizes = [8, 2], strides = [1, 1]} : vector<16x2xf32> to vector<8x2xf32>
    %21 = arith.mulf %19, %19 : vector<8x2xf32>
    %22 = arith.subf %20, %21 : vector<8x2xf32>
    %cst_14 = arith.constant 9.99999974E-6 : f32
    %23 = vector.broadcast %cst_14 : f32 to vector<8x2xf32>
    %24 = arith.addf %22, %23 : vector<8x2xf32>
    %25 = math.rsqrt %24 : vector<8x2xf32>
    %26 = arith.mulf %19, %25 : vector<8x2xf32>
    %27 = tpu.concatenate %26, %25 in 0 : vector<8x2xf32>, vector<8x2xf32> -> vector<16x2xf32>
    %cst_15 = arith.constant dense<0.000000e+00> : vector<16x512xf32>
    %28 = tpu.matmul %27, %11, %cst_15 {dimension_numbers = #tpu.dot_dimension_numbers<[1], [0], [0], [1], [0, 0, 1, 1], [], []>} : vector<16x2xf32>, vector<2x512xf32>, vector<16x512xf32> -> vector<16x512xf32>
    %29 = vector.extract_strided_slice %28 {offsets = [8, 0], sizes = [8, 512], strides = [1, 1]} : vector<16x512xf32> to vector<8x512xf32>
    %30 = arith.mulf %0, %29 : vector<8x512xf32>
    %31 = vector.extract_strided_slice %28 {offsets = [0, 0], sizes = [8, 512], strides = [1, 1]} : vector<16x512xf32> to vector<8x512xf32>
    %32 = arith.subf %30, %31 : vector<8x512xf32>
    %33 = vector.broadcast %13 : vector<8x1xf32> to vector<8x512xf32>
    %34 = arith.mulf %32, %33 : vector<8x512xf32>
    %35 = vector.broadcast %14 : vector<8x1xf32> to vector<8x512xf32>
    %36 = arith.addf %34, %35 : vector<8x512xf32>
    %37 = arith.negf %36 : vector<8x512xf32>
    %38 = math.exp %37 : vector<8x512xf32>
    %cst_16 = arith.constant 1.000000e+00 : f32
    %39 = vector.broadcast %cst_16 : f32 to vector<8x512xf32>
    %40 = arith.addf %39, %38 : vector<8x512xf32>
    %41 = arith.divf %39, %40 : vector<8x512xf32>
    %42 = arith.mulf %36, %41 : vector<8x512xf32>
    %c0_17 = arith.constant 0 : index
    %c0_18 = arith.constant 0 : index
    %43 = vector.load %arg9[%c0_17, %c0_18] : memref<16x72xf32, #tpu.memory_space<vmem>>, vector<16x72xf32>
    %c0_19 = arith.constant 0 : index
    %c0_20 = arith.constant 0 : index
    %44 = vector.load %arg2[%c0_19, %c0_20] : memref<16x512xf32, #tpu.memory_space<vmem>>, vector<16x512xf32>
    %c17_i32 = arith.constant 17 : i32
    %45 = tpu.dynamic_rotate %42 by %c17_i32 dim 1 : vector<8x512xf32>, i32 -> vector<8x512xf32>
    %46 = vector.broadcast %2 : vector<1x512xf32> to vector<8x512xf32>
    %47 = arith.mulf %45, %46 : vector<8x512xf32>
    %c16_i32 = arith.constant 16 : i32
    %48 = tpu.dynamic_rotate %42 by %c16_i32 dim 1 : vector<8x512xf32>, i32 -> vector<8x512xf32>
    %49 = vector.broadcast %3 : vector<1x512xf32> to vector<8x512xf32>
    %50 = arith.mulf %48, %49 : vector<8x512xf32>
    %c15_i32 = arith.constant 15 : i32
    %51 = tpu.dynamic_rotate %42 by %c15_i32 dim 1 : vector<8x512xf32>, i32 -> vector<8x512xf32>
    %52 = vector.broadcast %4 : vector<1x512xf32> to vector<8x512xf32>
    %53 = arith.mulf %51, %52 : vector<8x512xf32>
    %c1_i32 = arith.constant 1 : i32
    %54 = tpu.dynamic_rotate %42 by %c1_i32 dim 1 : vector<8x512xf32>, i32 -> vector<8x512xf32>
    %55 = vector.broadcast %5 : vector<1x512xf32> to vector<8x512xf32>
    %56 = arith.mulf %54, %55 : vector<8x512xf32>
    %c511_i32 = arith.constant 511 : i32
    %57 = tpu.dynamic_rotate %42 by %c511_i32 dim 1 : vector<8x512xf32>, i32 -> vector<8x512xf32>
    %58 = vector.broadcast %6 : vector<1x512xf32> to vector<8x512xf32>
    %59 = arith.mulf %57, %58 : vector<8x512xf32>
    %c497_i32 = arith.constant 497 : i32
    %60 = tpu.dynamic_rotate %42 by %c497_i32 dim 1 : vector<8x512xf32>, i32 -> vector<8x512xf32>
    %61 = vector.broadcast %7 : vector<1x512xf32> to vector<8x512xf32>
    %62 = arith.mulf %60, %61 : vector<8x512xf32>
    %c496_i32 = arith.constant 496 : i32
    %63 = tpu.dynamic_rotate %42 by %c496_i32 dim 1 : vector<8x512xf32>, i32 -> vector<8x512xf32>
    %64 = vector.broadcast %8 : vector<1x512xf32> to vector<8x512xf32>
    %65 = arith.mulf %63, %64 : vector<8x512xf32>
    %c495_i32 = arith.constant 495 : i32
    %66 = tpu.dynamic_rotate %42 by %c495_i32 dim 1 : vector<8x512xf32>, i32 -> vector<8x512xf32>
    %67 = vector.broadcast %9 : vector<1x512xf32> to vector<8x512xf32>
    %68 = arith.mulf %66, %67 : vector<8x512xf32>
    %69 = tpu.concatenate %47, %50, %53, %56, %42, %59, %62, %65, %68 in 0 : vector<8x512xf32>, vector<8x512xf32>, vector<8x512xf32>, vector<8x512xf32>, vector<8x512xf32>, vector<8x512xf32>, vector<8x512xf32>, vector<8x512xf32>, vector<8x512xf32> -> vector<72x512xf32>
    %cst_21 = arith.constant dense<0.000000e+00> : vector<16x512xf32>
    %70 = tpu.matmul %43, %69, %cst_21 {dimension_numbers = #tpu.dot_dimension_numbers<[1], [0], [0], [1], [0, 0, 1, 1], [], []>} : vector<16x72xf32>, vector<72x512xf32>, vector<16x512xf32> -> vector<16x512xf32>
    %71 = arith.addf %70, %44 : vector<16x512xf32>
    %c0_22 = arith.constant 0 : index
    %c0_23 = arith.constant 0 : index
    %72 = vector.load %arg10[%c0_22, %c0_23] : memref<32x32xf32, #tpu.memory_space<vmem>>, vector<32x32xf32>
    %c0_24 = arith.constant 0 : index
    %c0_25 = arith.constant 0 : index
    %73 = vector.load %arg11[%c0_24, %c0_25] : memref<16x1xf32, #tpu.memory_space<vmem>>, vector<16x1xf32>
    %c0_26 = arith.constant 0 : index
    %c0_27 = arith.constant 0 : index
    %74 = vector.load %arg12[%c0_26, %c0_27] : memref<16x1xf32, #tpu.memory_space<vmem>>, vector<16x1xf32>
    %75 = arith.mulf %71, %71 : vector<16x512xf32>
    %76 = tpu.concatenate %71, %75 in 0 : vector<16x512xf32>, vector<16x512xf32> -> vector<32x512xf32>
    %cst_28 = arith.constant dense<0.000000e+00> : vector<32x2xf32>
    %77 = tpu.matmul %76, %10, %cst_28 {dimension_numbers = #tpu.dot_dimension_numbers<[1], [0], [0], [1], [0, 0, 1, 1], [], []>} : vector<32x512xf32>, vector<512x2xf32>, vector<32x2xf32> -> vector<32x2xf32>
    %cst_29 = arith.constant dense<0.000000e+00> : vector<32x2xf32>
    %78 = tpu.matmul %72, %77, %cst_29 {dimension_numbers = #tpu.dot_dimension_numbers<[1], [0], [0], [1], [0, 0, 1, 1], [], []>} : vector<32x32xf32>, vector<32x2xf32>, vector<32x2xf32> -> vector<32x2xf32>
    %79 = vector.extract_strided_slice %78 {offsets = [0, 0], sizes = [16, 2], strides = [1, 1]} : vector<32x2xf32> to vector<16x2xf32>
    %80 = vector.extract_strided_slice %78 {offsets = [16, 0], sizes = [16, 2], strides = [1, 1]} : vector<32x2xf32> to vector<16x2xf32>
    %81 = arith.mulf %79, %79 : vector<16x2xf32>
    %82 = arith.subf %80, %81 : vector<16x2xf32>
    %cst_30 = arith.constant 9.99999974E-6 : f32
    %83 = vector.broadcast %cst_30 : f32 to vector<16x2xf32>
    %84 = arith.addf %82, %83 : vector<16x2xf32>
    %85 = math.rsqrt %84 : vector<16x2xf32>
    %86 = arith.mulf %79, %85 : vector<16x2xf32>
    %87 = tpu.concatenate %86, %85 in 0 : vector<16x2xf32>, vector<16x2xf32> -> vector<32x2xf32>
    %cst_31 = arith.constant dense<0.000000e+00> : vector<32x512xf32>
    %88 = tpu.matmul %87, %11, %cst_31 {dimension_numbers = #tpu.dot_dimension_numbers<[1], [0], [0], [1], [0, 0, 1, 1], [], []>} : vector<32x2xf32>, vector<2x512xf32>, vector<32x512xf32> -> vector<32x512xf32>
    %89 = vector.extract_strided_slice %88 {offsets = [16, 0], sizes = [16, 512], strides = [1, 1]} : vector<32x512xf32> to vector<16x512xf32>
    %90 = arith.mulf %71, %89 : vector<16x512xf32>
    %91 = vector.extract_strided_slice %88 {offsets = [0, 0], sizes = [16, 512], strides = [1, 1]} : vector<32x512xf32> to vector<16x512xf32>
    %92 = arith.subf %90, %91 : vector<16x512xf32>
    %93 = vector.broadcast %73 : vector<16x1xf32> to vector<16x512xf32>
    %94 = arith.mulf %92, %93 : vector<16x512xf32>
    %95 = vector.broadcast %74 : vector<16x1xf32> to vector<16x512xf32>
    %96 = arith.addf %94, %95 : vector<16x512xf32>
    %97 = arith.negf %96 : vector<16x512xf32>
    %98 = math.exp %97 : vector<16x512xf32>
    %cst_32 = arith.constant 1.000000e+00 : f32
    %99 = vector.broadcast %cst_32 : f32 to vector<16x512xf32>
    %100 = arith.addf %99, %98 : vector<16x512xf32>
    %101 = arith.divf %99, %100 : vector<16x512xf32>
    %102 = arith.mulf %96, %101 : vector<16x512xf32>
    %c0_33 = arith.constant 0 : index
    %c0_34 = arith.constant 0 : index
    %103 = vector.load %arg13[%c0_33, %c0_34] : memref<16x144xf32, #tpu.memory_space<vmem>>, vector<16x144xf32>
    %c0_35 = arith.constant 0 : index
    %c0_36 = arith.constant 0 : index
    %104 = vector.load %arg14[%c0_35, %c0_36] : memref<16x1xf32, #tpu.memory_space<vmem>>, vector<16x1xf32>
    %c17_i32_37 = arith.constant 17 : i32
    %105 = tpu.dynamic_rotate %102 by %c17_i32_37 dim 1 : vector<16x512xf32>, i32 -> vector<16x512xf32>
    %106 = vector.broadcast %2 : vector<1x512xf32> to vector<16x512xf32>
    %107 = arith.mulf %105, %106 : vector<16x512xf32>
    %c16_i32_38 = arith.constant 16 : i32
    %108 = tpu.dynamic_rotate %102 by %c16_i32_38 dim 1 : vector<16x512xf32>, i32 -> vector<16x512xf32>
    %109 = vector.broadcast %3 : vector<1x512xf32> to vector<16x512xf32>
    %110 = arith.mulf %108, %109 : vector<16x512xf32>
    %c15_i32_39 = arith.constant 15 : i32
    %111 = tpu.dynamic_rotate %102 by %c15_i32_39 dim 1 : vector<16x512xf32>, i32 -> vector<16x512xf32>
    %112 = vector.broadcast %4 : vector<1x512xf32> to vector<16x512xf32>
    %113 = arith.mulf %111, %112 : vector<16x512xf32>
    %c1_i32_40 = arith.constant 1 : i32
    %114 = tpu.dynamic_rotate %102 by %c1_i32_40 dim 1 : vector<16x512xf32>, i32 -> vector<16x512xf32>
    %115 = vector.broadcast %5 : vector<1x512xf32> to vector<16x512xf32>
    %116 = arith.mulf %114, %115 : vector<16x512xf32>
    %c511_i32_41 = arith.constant 511 : i32
    %117 = tpu.dynamic_rotate %102 by %c511_i32_41 dim 1 : vector<16x512xf32>, i32 -> vector<16x512xf32>
    %118 = vector.broadcast %6 : vector<1x512xf32> to vector<16x512xf32>
    %119 = arith.mulf %117, %118 : vector<16x512xf32>
    %c497_i32_42 = arith.constant 497 : i32
    %120 = tpu.dynamic_rotate %102 by %c497_i32_42 dim 1 : vector<16x512xf32>, i32 -> vector<16x512xf32>
    %121 = vector.broadcast %7 : vector<1x512xf32> to vector<16x512xf32>
    %122 = arith.mulf %120, %121 : vector<16x512xf32>
    %c496_i32_43 = arith.constant 496 : i32
    %123 = tpu.dynamic_rotate %102 by %c496_i32_43 dim 1 : vector<16x512xf32>, i32 -> vector<16x512xf32>
    %124 = vector.broadcast %8 : vector<1x512xf32> to vector<16x512xf32>
    %125 = arith.mulf %123, %124 : vector<16x512xf32>
    %c495_i32_44 = arith.constant 495 : i32
    %126 = tpu.dynamic_rotate %102 by %c495_i32_44 dim 1 : vector<16x512xf32>, i32 -> vector<16x512xf32>
    %127 = vector.broadcast %9 : vector<1x512xf32> to vector<16x512xf32>
    %128 = arith.mulf %126, %127 : vector<16x512xf32>
    %129 = tpu.concatenate %107, %110, %113, %116, %102, %119, %122, %125, %128 in 0 : vector<16x512xf32>, vector<16x512xf32>, vector<16x512xf32>, vector<16x512xf32>, vector<16x512xf32>, vector<16x512xf32>, vector<16x512xf32>, vector<16x512xf32>, vector<16x512xf32> -> vector<144x512xf32>
    %cst_45 = arith.constant dense<0.000000e+00> : vector<16x512xf32>
    %130 = tpu.matmul %103, %129, %cst_45 {dimension_numbers = #tpu.dot_dimension_numbers<[1], [0], [0], [1], [0, 0, 1, 1], [], []>} : vector<16x144xf32>, vector<144x512xf32>, vector<16x512xf32> -> vector<16x512xf32>
    %131 = vector.broadcast %104 : vector<16x1xf32> to vector<16x512xf32>
    %132 = arith.addf %130, %131 : vector<16x512xf32>
    %c0_46 = arith.constant 0 : index
    %c0_47 = arith.constant 0 : index
    %133 = vector.load %arg15[%c0_46, %c0_47] : memref<16x8xf32, #tpu.memory_space<vmem>>, vector<16x8xf32>
    %cst_48 = arith.constant dense<0.000000e+00> : vector<16x512xf32>
    %134 = tpu.matmul %133, %0, %cst_48 {dimension_numbers = #tpu.dot_dimension_numbers<[1], [0], [0], [1], [0, 0, 1, 1], [], []>} : vector<16x8xf32>, vector<8x512xf32>, vector<16x512xf32> -> vector<16x512xf32>
    %c0_49 = arith.constant 0 : index
    %c0_50 = arith.constant 0 : index
    %135 = vector.load %arg16[%c0_49, %c0_50] : memref<16x1xf32, #tpu.memory_space<vmem>>, vector<16x1xf32>
    %136 = vector.broadcast %135 : vector<16x1xf32> to vector<16x512xf32>
    %137 = arith.addf %134, %136 : vector<16x512xf32>
    %138 = arith.addf %132, %137 : vector<16x512xf32>
    %c0_51 = arith.constant 0 : index
    %c0_52 = arith.constant 0 : index
    %139 = vector.load %arg17[%c0_51, %c0_52] : memref<16x512xf32, #tpu.memory_space<vmem>>, vector<16x512xf32>
    tpu.vector_store %arg17[%c0_51, %c0_52], %138 {strides = array<i32>} : memref<16x512xf32, #tpu.memory_space<vmem>>, vector<16x512xf32>,
    return
  }
  func.func @transform_0(%arg0: i32) -> (i32, i32) {
    %c0_i32 = arith.constant 0 : i32
    %c0_i32_0 = arith.constant 0 : i32
    return %c0_i32, %arg0 : i32, i32
  }
  func.func @transform_1(%arg0: i32) -> (i32, i32) {
    %c0_i32 = arith.constant 0 : i32
    %c0_i32_0 = arith.constant 0 : i32
    return %c0_i32, %arg0 : i32, i32
  }
  func.func @transform_2(%arg0: i32) -> (i32, i32) {
    %c0_i32 = arith.constant 0 : i32
    %c0_i32_0 = arith.constant 0 : i32
    %c0_i32_1 = arith.constant 0 : i32
    return %c0_i32, %c0_i32_0 : i32, i32
  }
  func.func @transform_3(%arg0: i32) -> (i32, i32) {
    %c0_i32 = arith.constant 0 : i32
    %c0_i32_0 = arith.constant 0 : i32
    %c0_i32_1 = arith.constant 0 : i32
    return %c0_i32, %c0_i32_0 : i32, i32
  }
  func.func @transform_4(%arg0: i32) -> (i32, i32) {
    %c0_i32 = arith.constant 0 : i32
    %c0_i32_0 = arith.constant 0 : i32
    %c0_i32_1 = arith.constant 0 : i32
    return %c0_i32, %c0_i32_0 : i32, i32
  }
  func.func @transform_5(%arg0: i32) -> (i32, i32) {
    %c0_i32 = arith.constant 0 : i32
    %c0_i32_0 = arith.constant 0 : i32
    %c0_i32_1 = arith.constant 0 : i32
    return %c0_i32, %c0_i32_0 : i32, i32
  }
  func.func @transform_6(%arg0: i32) -> (i32, i32) {
    %c0_i32 = arith.constant 0 : i32
    %c0_i32_0 = arith.constant 0 : i32
    %c0_i32_1 = arith.constant 0 : i32
    return %c0_i32, %c0_i32_0 : i32, i32
  }
  func.func @transform_7(%arg0: i32) -> (i32, i32) {
    %c0_i32 = arith.constant 0 : i32
    %c0_i32_0 = arith.constant 0 : i32
    %c0_i32_1 = arith.constant 0 : i32
    return %c0_i32, %c0_i32_0 : i32, i32
  }
  func.func @transform_8(%arg0: i32) -> (i32, i32) {
    %c0_i32 = arith.constant 0 : i32
    %c0_i32_0 = arith.constant 0 : i32
    %c0_i32_1 = arith.constant 0 : i32
    return %c0_i32, %c0_i32_0 : i32, i32
  }
  func.func @transform_9(%arg0: i32) -> (i32, i32) {
    %c0_i32 = arith.constant 0 : i32
    %c0_i32_0 = arith.constant 0 : i32
    %c0_i32_1 = arith.constant 0 : i32
    return %c0_i32, %c0_i32_0 : i32, i32
  }
  func.func @transform_10(%arg0: i32) -> (i32, i32) {
    %c0_i32 = arith.constant 0 : i32
    %c0_i32_0 = arith.constant 0 : i32
    %c0_i32_1 = arith.constant 0 : i32
    return %c0_i32, %c0_i32_0 : i32, i32
  }
  func.func @transform_11(%arg0: i32) -> (i32, i32) {
    %c0_i32 = arith.constant 0 : i32
    %c0_i32_0 = arith.constant 0 : i32
    %c0_i32_1 = arith.constant 0 : i32
    return %c0_i32, %c0_i32_0 : i32, i32
  }
  func.func @transform_12(%arg0: i32) -> (i32, i32) {
    %c0_i32 = arith.constant 0 : i32
    %c0_i32_0 = arith.constant 0 : i32
    %c0_i32_1 = arith.constant 0 : i32
    return %c0_i32, %c0_i32_0 : i32, i32
  }
  func.func @transform_13(%arg0: i32) -> (i32, i32) {
    %c0_i32 = arith.constant 0 : i32
    %c0_i32_0 = arith.constant 0 : i32
    %c0_i32_1 = arith.constant 0 : i32
    return %c0_i32, %c0_i32_0 : i32, i32
  }
  func.func @transform_14(%arg0: i32) -> (i32, i32) {
    %c0_i32 = arith.constant 0 : i32
    %c0_i32_0 = arith.constant 0 : i32
    %c0_i32_1 = arith.constant 0 : i32
    return %c0_i32, %c0_i32_0 : i32, i32
  }
  func.func @transform_15(%arg0: i32) -> (i32, i32) {
    %c0_i32 = arith.constant 0 : i32
    %c0_i32_0 = arith.constant 0 : i32
    %c0_i32_1 = arith.constant 0 : i32
    return %c0_i32, %c0_i32_0 : i32, i32
  }
  func.func @transform_16(%arg0: i32) -> (i32, i32) {
    %c0_i32 = arith.constant 0 : i32
    %c0_i32_0 = arith.constant 0 : i32
    return %c0_i32, %arg0 : i32, i32
  }
}

</mosaic_0001>

<bundles_post_ra>
// kernel: tpu_custom_call.1
= control target key start
LH: loop header
LB: loop body
LE: loop exit
PB: predicated region body
PF: predicated region fallthrough
CT: control target
= control target key end

     0   :  { %s4650_s0 = inlined_call_operand.vmem [shape: f32[8,1024], index: 0, kind: input, shape index: {}]   ;;  %s4651_s1 = inlined_call_operand.vmem [shape: f32[16,1024], index: 1, kind: input, shape index: {}]   ;;  %s4652_s2 = inlined_call_operand.vmem [shape: f32[9,512], index: 2, kind: input, shape index: {}]   ;;  %s4653_s3 = inlined_call_operand.vmem [shape: f32[512,2], index: 3, kind: input, shape index: {}]   ;;  %s4654_s4 = inlined_call_operand.vmem [shape: f32[2,512], index: 4, kind: input, shape index: {}]   ;;  %s4655_s5 = inlined_call_operand.vmem [shape: f32[16,16], index: 5, kind: input, shape index: {}]   ;;  %s4656_s6 = inlined_call_operand.vmem [shape: f32[8,1], index: 6, kind: input, shape index: {}]   ;;  %s4657_s7 = inlined_call_operand.vmem [shape: f32[8,1], index: 7, kind: input, shape index: {}]   ;;  %s4658_s8 = inlined_call_operand.vmem [shape: f32[16,72], index: 8, kind: input, shape index: {}]   ;;  %s4659_s9 = inlined_call_operand.vmem [shape: f32[32,32], index: 9, kind: input, shape index: {}]   ;;  %s4660_s10 = inlined_call_operand.vmem [shape: f32[16,1], index: 10, kind: input, shape index: {}]   ;;  %s4661_s11 = inlined_call_operand.vmem [shape: f32[16,1], index: 11, kind: input, shape index: {}]   ;;  %s4662_s12 = inlined_call_operand.vmem [shape: f32[16,144], index: 12, kind: input, shape index: {}]   ;;  %s4663_s13 = inlined_call_operand.vmem [shape: f32[16,1], index: 13, kind: input, shape index: {}]   ;;  %s4664_s14 = inlined_call_operand.vmem [shape: f32[16,8], index: 14, kind: input, shape index: {}]   ;;  %s4665_s15 = inlined_call_operand.vmem [shape: f32[16,1], index: 15, kind: input, shape index: {}]   ;;  %s4666_s16 = inlined_call_operand.hbm [shape: f32[16,1024], index: 16, kind: output, shape index: {}]  }
   0x1   :  { %4719 = sst [smem:[#allocation30_spill]] %s4650_s0 }
   0x2   :  { %4720 = sst [smem:[#allocation31_spill]] %s4651_s1 }
   0x3   :  { %4721 = sst [smem:[#allocation32_spill]] %s4652_s2 }
   0x4   :  { %4722 = sst [smem:[#allocation33_spill]] %s4653_s3 }
   0x5   :  { %21 = vsyncpa [#allocation4], 0 }
   0x6   :  { %23 = vsyncpa [#allocation4 + $0x1], 0  ;;  %s2953_s21 = smov 0   ;;  %s2955_s22 = smov 0  }
   0x7   :  { %s2957_s23 = smov 0   ;;  %s2959_s24 = smov 0  }
   0x8 LB: > { %4723 = sst [smem:[#allocation6_spill]] %s2850_s23  ;;  %s2974_s25 = sadd.s32 4294967295, %s2854_s24   ;;  %s2854_s24 = sphi %s2959_s24, %s4783_s24   ;;  %s2850_s23 = sphi %s2957_s23, %s4785_s23   ;;  %s2846_s22 = sphi %s2955_s22, %s4787_s22   ;;  %s2842_s21 = sphi %s2953_s21, %s4786_s21  }
   0x9   : > { %4724 = sst [smem:[#allocation7_spill]] %s2854_s24  ;;  %s2540_s26 = sadd.s32 4294967294, %s2854_s24  }
   0xa   : > { %s2978_s27 = sadd.s32 1, %s2854_s24   ;;  %s62_s28 = sadd.s32 1, %s2850_s23 }
   0xb   : > { %4725 = sst [smem:[#allocation8_spill]] %s2978_s27  ;;  %s59_s29 = ssub.s32 %s2854_s24, %s2978_s27 }
   0xc   : > { %p69_p0 = scmp.ne.s32.totalorder %s2850_s23, %s2846_s22  ;;  %p60_p1 = scmp.eq.s32.totalorder %s59_s29, 0 }
   0xd   : > { %p70_p2 = scmp.eq.s32.totalorder %s2854_s24, 0  ;;  %p393_p3 = scmp.eq.s32.totalorder %s2974_s25, 1 }
   0xe   : > { %p398_p4 = scmp.ne.s32.totalorder %s2846_s22, %s2842_s21  ;;  %p399_p7 = scmp.eq.s32.totalorder %s2540_s26, 1 }
   0xf   : > { %s2990_s30 = scalar_select %p60_p1, %s2850_s23, %s62_s28  }
  0x10   : > { %p71_p5 = por %p70_p2, %p69_p0  ;;  %p2992_p6 = por %p393_p3, %p69_p0 }
  0x11   : > { %4726 = sst [smem:[#allocation9_spill]] %s2990_s30  ;;  %p2996_p8 = por %p399_p7, %p398_p4 }
  0x12   : > { %p2542_p9 = scmp.ge.s32.totalorder %s2854_s24, 2 }
  0x14   : > { %457 = sbr.rel (%p2542_p9) target bundleno = 43 (0x2b), region = 72 }
  0x19   : > { %469 = sbr.rel (!%p71_p5) target bundleno = 43 (0x2b), region = 80  ;;  %s471_s18 = sand.u32 (%p71_p5), 1, %s2850_s23  }
  0x1a   : > { %s2630_s19 = sshll.u32 (%p71_p5), %s2854_s24, 5  ;;  %s2543_s20 = sshll.u32 (%p71_p5), %s471_s18, 6 }
  0x1b   : > { %s4729_s1 = sld [smem:[#allocation31_spill]] (%p71_p5)  ;;  %s473_s26 = scalar_lea.vmem (%p71_p5), [#allocation2], %s2543_s20 }
  0x21   : > { %s476_s30 = scalar_lea.vmem %s4729_s1, %s2630_s19 }
  0x22   : > { %v489_v0 = vld [vmem:[%s476_s30] sm:$0xff]  ;;  %v491_v1 = vld [vmem:[%s476_s30 + $0x8] sm:$0xff]  ;;  %v493_v2 = vld [vmem:[%s476_s30 + $0x10] sm:$0xff] }
  0x23   : > { %490 = vst [vmem:[%s473_s26] sm:$0xff] %v489_v0  ;;  %v495_v3 = vld [vmem:[%s476_s30 + $0x18] sm:$0xff]  ;;  %v497_v4 = vld [vmem:[%s476_s30 + $0x40] sm:$0xff]  ;;  %v499_v5 = vld [vmem:[%s476_s30 + $0x48] sm:$0xff] }
  0x24   : > { %492 = vst [vmem:[%s473_s26 + $0x8] sm:$0xff] %v491_v1  ;;  %v501_v6 = vld [vmem:[%s476_s30 + $0x50] sm:$0xff]  ;;  %v503_v7 = vld [vmem:[%s476_s30 + $0x58] sm:$0xff] }
  0x25   : > { %494 = vst [vmem:[%s473_s26 + $0x10] sm:$0xff] %v493_v2 }
  0x26   : > { %496 = vst [vmem:[%s473_s26 + $0x18] sm:$0xff] %v495_v3 }
  0x27   : > { %498 = vst [vmem:[%s473_s26 + $0x20] sm:$0xff] %v497_v4 }
  0x28   : > { %500 = vst [vmem:[%s473_s26 + $0x28] sm:$0xff] %v499_v5 }
  0x29   : > { %502 = vst [vmem:[%s473_s26 + $0x30] sm:$0xff] %v501_v6 }
  0x2a   : > { %504 = vst [vmem:[%s473_s26 + $0x38] sm:$0xff] %v503_v7 }
  0x2b PF: > { %p2546_p10 = scmp.ge.s32.totalorder %s2854_s24, 1  ;;  %p509_p11 = scmp.lt.s32.totalorder %s2854_s24, 3 }
  0x2d   : > { %p510_p12 = pnand %p2546_p10, %p509_p11 }
  0x2f   : > { %513 = sbr.rel (%p510_p12) target bundleno = 1867 (0x74b), region = 103 }
  0x34   : > { %s4730_s3 = sld [smem:[#allocation33_spill]]  ;;  %s2549_s1 = sshll.u32 %s2974_s25, 2  ;;  %vm755_vm0 = vcmask 130048   ;;  %vm812_vm1 = vcmask 1041408   ;;  %vm805_vm5 = vcmask 15360  }
  0x35   : > { %p3135_p13 = scmp.lt.s32.totalorder %s2549_s1, 7  ;;  %s4732_s26 = sld [smem:[#allocation30_spill]] }
  0x36   : > { %s4681_s27 = smov 1   ;;  %s4673_s19 = smov 127  }
  0x37   : > { %s4789_s1 = smov (!%p3135_p13, %s2549_s1), 7  ;;  %s4689_s24 = smov 16  }
  0x38   : > { %s2550_s20 = sshll.u32 %s4789_s1, 3  ;;  %s4675_s28 = smov 112  }
  0x39   : > { %s4687_s30 = smov 15   ;;  %s4677_s29 = smov 113  }
  0x3a   : > { %v637_v8 = vld [vmem:[%s4730_s3 + $0x178] sm:$0xff]  ;;  %v636_v9 = vld [vmem:[%s4730_s3 + $0x170] sm:$0xff]  ;;  %v635_v13 = vld [vmem:[%s4730_s3 + $0x168] sm:$0xff]  ;;  %s4733_s2 = sld [smem:[#allocation32_spill]]  ;;  %s4750_s23 = smov 16  }
  0x3b   : > { %v653_v10 = vld [vmem:[%s4730_s3 + $0x1f8] sm:$0xff]  ;;  %709 = vmatpush.msra.mxu2 %v637_v8  ;;  %v652_v14 = vld [vmem:[%s4730_s3 + $0x1f0] sm:$0xff]  ;;  %v651_v17 = vld [vmem:[%s4730_s3 + $0x1e8] sm:$0xff]  ;;  %s3249_s18 = scalar_lea.vmem %s4732_s26, %s2550_s20  ;;  %s4671_s20 = smov 111  }
  0x3c   : > { %732 = vmatpush.msra.mxu3 %v653_v10  ;;  %v605_v11 = vld [vmem:[%s4730_s3 + $0x78] sm:$0xff]  ;;  %v604_v15 = vld [vmem:[%s4730_s3 + $0x70] sm:$0xff]  ;;  %v603_v18 = vld [vmem:[%s4730_s3 + $0x68] sm:$0xff]  ;;  %s4679_s26 = smov 17   ;;  %s4758_s1 = smov 111  }
  0x3d   : > { %v621_v12 = vld [vmem:[%s4730_s3 + $0xf8] sm:$0xff]  ;;  %663 = vmatpush.msra.mxu0 %v605_v11  ;;  %v3037_v16 = vld [vmem:[%s4730_s3 + $0xf0] sm:$0xff]  ;;  %710 = vmatpush.msra.mxu2 %v636_v9  ;;  %v634_v19 = vld [vmem:[%s4730_s3 + $0x160] sm:$0xff] }
  0x3e   : > { %686 = vmatpush.msra.mxu1 %v621_v12  ;;  %733 = vmatpush.msra.mxu3 %v652_v14  ;;  %v3052_v20 = vld [vmem:[%s4730_s3 + $0xe8] sm:$0xff]  ;;  %v650_v21 = vld [vmem:[%s4730_s3 + $0x1e0] sm:$0xff]  ;;  %v633_v24 = vld [vmem:[%s4730_s3 + $0x158] sm:$0xff] }
  0x3f   : > { %664 = vmatpush.msra.mxu0 %v604_v15  ;;  %711 = vmatpush.msra.mxu2 %v635_v13  ;;  %v602_v22 = vld [vmem:[%s4730_s3 + $0x60] sm:$0xff]  ;;  %v649_v25 = vld [vmem:[%s4730_s3 + $0x1d8] sm:$0xff]  ;;  %v632_v28 = vld [vmem:[%s4730_s3 + $0x150] sm:$0xff] }
  0x40   : > { %687 = vmatpush.msra.mxu1 %v3037_v16  ;;  %734 = vmatpush.msra.mxu3 %v651_v17  ;;  %v3063_v23 = vld [vmem:[%s4730_s3 + $0xe0] sm:$0xff]  ;;  %v601_v26 = vld [vmem:[%s4730_s3 + $0x58] sm:$0xff]  ;;  %v648_v29 = vld [vmem:[%s4730_s3 + $0x1d0] sm:$0xff] }
  0x41   : > { %665 = vmatpush.msra.mxu0 %v603_v18  ;;  %712 = vmatpush.msra.mxu2 %v634_v19  ;;  %v3078_v27 = vld [vmem:[%s4730_s3 + $0xd8] sm:$0xff]  ;;  %v600_v30 = vld [vmem:[%s4730_s3 + $0x50] sm:$0xff]  ;;  %v631_v32 = vld [vmem:[%s4730_s3 + $0x148] sm:$0xff] }
  0x42   : > { %688 = vmatpush.msra.mxu1 %v3052_v20  ;;  %735 = vmatpush.msra.mxu3 %v650_v21  ;;  %v3093_v31 = vld [vmem:[%s4730_s3 + $0xd0] sm:$0xff]  ;;  %v647_v33 = vld [vmem:[%s4730_s3 + $0x1c8] sm:$0xff]  ;;  %v630_v36 = vld [vmem:[%s4730_s3 + $0x140] sm:$0xff] }
  0x43   : > { %666 = vmatpush.msra.mxu0 %v602_v22  ;;  %713 = vmatpush.msra.mxu2 %v633_v24  ;;  %v599_v34 = vld [vmem:[%s4730_s3 + $0x48] sm:$0xff]  ;;  %v646_v37 = vld [vmem:[%s4730_s3 + $0x1c0] sm:$0xff]  ;;  %v629_v40 = vld [vmem:[%s4730_s3 + $0x138] sm:$0xff] }
  0x44   : > { %689 = vmatpush.msra.mxu1 %v3063_v23  ;;  %736 = vmatpush.msra.mxu3 %v649_v25  ;;  %v3108_v35 = vld [vmem:[%s4730_s3 + $0xc8] sm:$0xff]  ;;  %v598_v38 = vld [vmem:[%s4730_s3 + $0x40] sm:$0xff]  ;;  %v645_v41 = vld [vmem:[%s4730_s3 + $0x1b8] sm:$0xff] }
  0x45   : > { %667 = vmatpush.msra.mxu0 %v601_v26  ;;  %714 = vmatpush.msra.mxu2 %v632_v28  ;;  %v3124_v39 = vld [vmem:[%s4730_s3 + $0xc0] sm:$0xff]  ;;  %v597_v42 = vld [vmem:[%s4730_s3 + $0x38] sm:$0xff]  ;;  %v628_v44 = vld [vmem:[%s4730_s3 + $0x130] sm:$0xff] }
  0x46   : > { %690 = vmatpush.msra.mxu1 %v3078_v27  ;;  %737 = vmatpush.msra.mxu3 %v648_v29  ;;  %v3145_v43 = vld [vmem:[%s4730_s3 + $0xb8] sm:$0xff]  ;;  %v644_v45 = vld [vmem:[%s4730_s3 + $0x1b0] sm:$0xff]  ;;  %v627_v48 = vld [vmem:[%s4730_s3 + $0x128] sm:$0xff] }
  0x47   : > { %668 = vmatpush.msra.mxu0 %v600_v30  ;;  %715 = vmatpush.msra.mxu2 %v631_v32  ;;  %v596_v46 = vld [vmem:[%s4730_s3 + $0x30] sm:$0xff]  ;;  %v643_v49 = vld [vmem:[%s4730_s3 + $0x1a8] sm:$0xff]  ;;  %v626_v52 = vld [vmem:[%s4730_s3 + $0x120] sm:$0xff] }
  0x48   : > { %691 = vmatpush.msra.mxu1 %v3093_v31  ;;  %738 = vmatpush.msra.mxu3 %v647_v33  ;;  %v3160_v47 = vld [vmem:[%s4730_s3 + $0xb0] sm:$0xff]  ;;  %v595_v50 = vld [vmem:[%s4730_s3 + $0x28] sm:$0xff]  ;;  %v625_v53 = vld [vmem:[%s4730_s3 + $0x118] sm:$0xff] }
  0x49   : > { %669 = vmatpush.msra.mxu0 %v599_v34  ;;  %716 = vmatpush.msra.mxu2 %v630_v36  ;;  %v3181_v51 = vld [vmem:[%s4730_s3 + $0xa8] sm:$0xff]  ;;  %v642_v54 = vld [vmem:[%s4730_s3 + $0x1a0] sm:$0xff]  ;;  %v641_v57 = vld [vmem:[%s4730_s3 + $0x198] sm:$0xff] }
  0x4a   : > { %692 = vmatpush.msra.mxu1 %v3108_v35  ;;  %739 = vmatpush.msra.mxu3 %v646_v37  ;;  %v594_v55 = vld [vmem:[%s4730_s3 + $0x20] sm:$0xff]  ;;  %v593_v58 = vld [vmem:[%s4730_s3 + $0x18] sm:$0xff]  ;;  %v3218_v60 = vld [vmem:[%s4730_s3 + $0x110] sm:$0xff] }
  0x4b   : > { %670 = vmatpush.msra.mxu0 %v598_v38  ;;  %717 = vmatpush.msra.mxu2 %v629_v40  ;;  %v3199_v56 = vld [vmem:[%s4730_s3 + $0xa0] sm:$0xff]  ;;  %v3211_v59 = vld [vmem:[%s4730_s3 + $0x98] sm:$0xff]  ;;  %v3223_v61 = vld [vmem:[%s4730_s3 + $0x190] sm:$0xff] }
  0x4c   : > { %693 = vmatpush.msra.mxu1 %v3124_v39  ;;  %740 = vmatpush.msra.mxu3 %v645_v41  ;;  %v3228_v62 = vld [vmem:[%s4730_s3 + $0x10] sm:$0xff]  ;;  %v3239_v0 = vld [vmem:[%s4730_s3 + $0x108] sm:$0xff]  ;;  %v3268_v4 = vld [vmem:[%s4730_s3 + $0x100] sm:$0xff] }
  0x4d   : > { %671 = vmatpush.msra.mxu0 %v597_v42  ;;  %718 = vmatpush.msra.mxu2 %v628_v44  ;;  %v3233_v63 = vld [vmem:[%s4730_s3 + $0x90] sm:$0xff]  ;;  %v3244_v1 = vld [vmem:[%s4730_s3 + $0x188] sm:$0xff]  ;;  %v3273_v5 = vld [vmem:[%s4730_s3 + $0x180] sm:$0xff] }
  0x4e   : > { %694 = vmatpush.msra.mxu1 %v3145_v43  ;;  %741 = vmatpush.msra.mxu3 %v644_v45  ;;  %v3256_v2 = vld [vmem:[%s4730_s3 + $0x8] sm:$0xff]  ;;  %v3278_v6 = vld [vmem:[%s3249_s18 + $0x10] sm:$0xff]  ;;  %v3281_v7 = vld [vmem:[%s3249_s18 + $0x18] sm:$0xff] }
  0x4f   : > { %672 = vmatpush.msra.mxu0 %v596_v46  ;;  %719 = vmatpush.msra.mxu2 %v627_v48  ;;  %v3261_v3 = vld [vmem:[%s4730_s3 + $0x88] sm:$0xff]  ;;  %v3288_v8 = vld [vmem:[%s4730_s3] sm:$0xff]  ;;  %v661_v12 = vmul.f32 %v3278_v6, %v3278_v6  ;;  %v662_v13 = vmul.f32 %v3281_v7, %v3281_v7  ;;  %v2856_v46 = vmov 0  }
  0x50   : > { %695 = vmatpush.msra.mxu1 %v3160_v47  ;;  %742 = vmatpush.msra.mxu3 %v643_v49  ;;  %v3293_v9 = vld [vmem:[%s4730_s3 + $0x80] sm:$0xff]  ;;  %v3301_v11 = vld [vmem:[%s3249_s18 + $0x8] sm:$0xff] }
  0x51   : > { %673 = vmatpush.msra.mxu0 %v595_v50  ;;  %720 = vmatpush.msra.mxu2 %v626_v52  ;;  %v3298_v10 = vld [vmem:[%s3249_s18] sm:$0xff]  ;;  %v660_v15 = vmul.f32 %v3301_v11, %v3301_v11  ;;  %v656_v37 = vld [vmem:[%s4655_s5 + $0x8] sm:$0xff] }
  0x52   : > { %696 = vmatpush.msra.mxu1 %v3181_v51  ;;  %743 = vmatpush.msra.mxu3 %v642_v54  ;;  %v659_v14 = vmul.f32 %v3298_v10, %v3298_v10  ;;  %v655_v36 = vld [vmem:[%s4655_s5] sm:$0xff] }
  0x53   : > { %674 = vmatpush.msra.mxu0 %v594_v55  ;;  %721 = vmatpush.msra.mxu2 %v625_v53  ;;  %v654_v38 = vld [vmem:[%s4654_s4] sm:$0xff] }
  0x54   : > { %697 = vmatpush.msra.mxu1 %v3199_v56  ;;  %744 = vmatpush.msra.mxu3 %v641_v57  ;;  %800 = vst [vmem:[#allocation1] ss:$4 sm:$0xff] %v654_v38  ;;  %v657_v52 = vld [vmem:[%s4656_s6] sm:$0xff] }
  0x55   : > { %675 = vmatpush.msra.mxu0 %v593_v58  ;;  %722 = vmatpush.msra.mxu2 %v3218_v60  ;;  %v658_v54 = vld [vmem:[%s4657_s7] sm:$0xff] }
  0x56   : > { %698 = vmatpush.msra.mxu1 %v3211_v59  ;;  %745 = vmatpush.msra.mxu3 %v3223_v61 }
  0x57   : > { %676 = vmatpush.msra.mxu0 %v3228_v62  ;;  %723 = vmatpush.msra.mxu2 %v3239_v0 }
  0x58   : > { %699 = vmatpush.msra.mxu1 %v3233_v63  ;;  %746 = vmatpush.msra.mxu3 %v3244_v1 }
  0x59   : > { %677 = vmatpush.msra.mxu0 %v3256_v2  ;;  %724 = vmatpush.msra.mxu2 %v3268_v4 }
  0x5a   : > { %700 = vmatpush.msra.mxu1 %v3261_v3  ;;  %747 = vmatpush.msra.mxu3 %v3273_v5 }
  0x5b   : > { %725 = vmatmul.f32.vlgmr.msra.gmra.mxu2 %v3278_v6  ;;  %748 = vmatmul.f32.vlgmr.msra.gmra.mxu3 %v3281_v7  ;;  %v801_v40 = vld.sshfl [vmem:[#allocation1] sm:$0xff pattern:$0x73625140]  ;;  %v802_v41 = vld.sshfl [vmem:[#allocation1 + $0x8] sm:$0xff pattern:$0x73625140] }
  0x5c   : > { %678 = vmatpush.msra.mxu0 %v3288_v8  ;;  %701 = vmatpush.msra.mxu1 %v3293_v9  ;;  %v803_v44 = vld.sshfl [vmem:[#allocation1 + $0x10] sm:$0xff pattern:$0x73625140]  ;;  %v804_v45 = vld.sshfl [vmem:[#allocation1 + $0x18] sm:$0xff pattern:$0x73625140] }
  0x5d   : > { %679 = vmatmul.f32.vlgmr.msra.gmra.mxu0 %v3298_v10  ;;  %702 = vmatmul.f32.vlgmr.msra.gmra.mxu1 %v3301_v11  ;;  %1500 = vst [vmem:[#allocation1] ss:$4 sm:$0xff] %v654_v38 }
  0x5e   : > { %2553 = vmatpush.msk.msrb.mxu1 %vm812_vm1, %v801_v40  ;;  %2556 = vmatpush.msk.msrb.mxu2 %vm812_vm1, %v802_v41 }
  0x5f   : > { %2559 = vmatpush.msk.msrb.mxu3 %vm812_vm1, %v803_v44  ;;  %2683 = vset.pattern.permute.xlu0 %v2856_v46 }
  0x60   : > { %2684 = vset.pattern.permute.xlu1 %v2856_v46  ;;  %2685 = vset.pattern.permute.xlu2 %v2856_v46 }
  0x61   : > { %923 = vperm.xlu0 %2683, %v657_v52  }
  0x63   : > { %728 = vmatmul.f32.gmra.mxu2 %v661_v12  ;;  %751 = vmatmul.f32.gmra.mxu3 %v662_v13 }
  0x65   : > { %682 = vmatmul.f32.gmra.mxu0 %v659_v14  ;;  %705 = vmatmul.f32.gmra.mxu1 %v660_v15 }
  0x69   : > { %932 = vperm.xlu0 %2683, %v658_v54  }
  0xda   : > { %v680_v17 = vpop.f32.mrf.mxu0  ;;  %v703_v18 = vpop.f32.mrf.mxu1 }
  0xdb   : > { %v704_v25 = vadd.f32 %v703_v18, %v680_v17 }
  0xde   : > { %v726_v19 = vpop.f32.mrf.mxu2  ;;  %v749_v21 = vpop.f32.mrf.mxu3 }
  0xdf   : > { %v727_v30 = vadd.f32 %v726_v19, %v704_v25 }
  0xe1   : > { %v750_v34 = vadd.f32 %v749_v21, %v727_v30  ;;  %v924_v21 = vpop.permute.xlu0 %923 }
  0xe2   : > { %v683_v22 = vpop.f32.mrf.mxu0  ;;  %v706_v24 = vpop.f32.mrf.mxu1 }
  0xe3   : > { %v707_v26 = vadd.f32 %v706_v24, %v683_v22 }
  0xe6   : > { %v729_v28 = vpop.f32.mrf.mxu2  ;;  %v752_v29 = vpop.f32.mrf.mxu3 }
  0xe7   : > { %v730_v32 = vadd.f32 %v729_v28, %v707_v26 }
  0xe9   : > { %v753_v33 = vadd.f32 %v752_v29, %v730_v32 }
  0xeb   : > { %776 = vmatpush.msrb.mxu0 %v753_v33 }
  0xed   : > { %777 = vmatpush.msrb.mxu0 %v750_v34  ;;  %v933_v34 = vpop.permute.xlu0 %932 }
  0xee   : > { %2551 = vmatmul.msk.f32.vlgmr.msrb.gmra.mxu0 %vm755_vm0, %v655_v36 }
  0xef   : > { %2562 = vmatpush.msk.msra.mxu0 %vm812_vm1, %v804_v45 }
  0xf6   : > { %2552 = vmatmul.msk.f32.gmra.mxu0 %vm755_vm0, %v656_v37 }
 0x16b   : > { %v779_v42 = vpop.f32.mrf.mxu0 }
 0x16c   : > { %v785_v48 = vmul.f32 %v779_v42, %v779_v42 }
 0x173   : > { %v782_v49 = vpop.f32.mrf.mxu0 }
 0x174   : > { %v786_v50 = vsub.f32 %v782_v49, %v785_v48 }
 0x176   : > { %v787_v53 = vadd.f32 1e-05, %v786_v50 }
 0x178   : > { %2690 = vrsqrt.f32 %v787_v53  ;;  %vm794_vm3 = vweird.f32 %v787_v53 }
 0x17e   : > { %v2691_v55 = vpop.eup %2690 }
 0x17f   : > { %v789_v57 = vmul.f32 %v2691_v55, %v787_v53  ;;  %vm795_vm2 = vweird.f32 %v2691_v55 }
 0x180   : > { %vm796_vm4 = vmor %vm794_vm3, %vm795_vm2 }
 0x181   : > { %v790_v58 = vmul.f32 %v2691_v55, %v789_v57 }
 0x183   : > { %v791_v12 = vmul.f32 0.5, %v790_v58 }
 0x185   : > { %v792_v13 = vsub.f32 1.5, %v791_v12 }
 0x187   : > { %v793_v14 = vmul.f32 %v2691_v55, %v792_v13 }
 0x189   : > { %v797_v15 = vsel %vm796_vm4, %v2691_v55, %v793_v14 }
 0x18a   : > { %v798_v17 = vmul.f32 %v797_v15, %v779_v42 }
 0x18c   : > { %2554 = vmatmul.msk.f32.vlgmr.msrb.gmra.mxu1 %vm805_vm5, %v798_v17  ;;  %2557 = vmatmul.msk.f32.vlgmr.msrb.gmra.mxu2 %vm805_vm5, %v798_v17 }
 0x18d   : > { %2560 = vmatmul.msk.f32.vlgmr.msrb.gmra.mxu3 %vm805_vm5, %v798_v17  ;;  %2563 = vmatmul.msk.f32.vlgmr.msra.gmra.mxu0 %vm805_vm5, %v798_v17 }
 0x194   : > { %2555 = vmatmul.msk.f32.gmra.mxu1 %vm805_vm5, %v797_v15  ;;  %2558 = vmatmul.msk.f32.gmra.mxu2 %vm805_vm5, %v797_v15 }
 0x195   : > { %2561 = vmatmul.msk.f32.gmra.mxu3 %vm805_vm5, %v797_v15  ;;  %2564 = vmatmul.msk.f32.gmra.mxu0 %vm805_vm5, %v797_v15 }
 0x209   : > { %v838_v18 = vpop.f32.mrf.mxu1 }
 0x20a   : > { %v907_v19 = vpop.f32.mrf.mxu0 }
 0x20f   : > { %v861_v22 = vpop.f32.mrf.mxu2 }
 0x210   : > { %v884_v24 = vpop.f32.mrf.mxu3 }
 0x211   : > { %v841_v25 = vpop.f32.mrf.mxu1 }
 0x212   : > { %v913_v26 = vmul.f32 %v841_v25, %v3298_v10  ;;  %v910_v28 = vpop.f32.mrf.mxu0 }
 0x213   : > { %v916_v29 = vmul.f32 %v910_v28, %v3281_v7 }
 0x214   : > { %v917_v30 = vsub.f32 %v913_v26, %v838_v18 }
 0x215   : > { %v920_v32 = vsub.f32 %v916_v29, %v907_v19 }
 0x216   : > { %v926_v33 = vmul.f32 %v924_v21, %v917_v30 }
 0x217   : > { %v929_v36 = vmul.f32 %v924_v21, %v920_v32  ;;  %v864_v37 = vpop.f32.mrf.mxu2 }
 0x218   : > { %v935_v38 = vadd.f32 %v933_v34, %v926_v33  ;;  %v914_v40 = vmul.f32 %v864_v37, %v3301_v11  ;;  %v887_v41 = vpop.f32.mrf.mxu3 }
 0x219   : > { %v938_v42 = vadd.f32 %v933_v34, %v929_v36  ;;  %v915_v44 = vmul.f32 %v887_v41, %v3278_v6 }
 0x21a   : > { %v2565_v45 = vmul.f32 -1.442695, %v935_v38  ;;  %v918_v46 = vsub.f32 %v914_v40, %v861_v22 }
 0x21b   : > { %v2568_v48 = vmul.f32 -1.442695, %v938_v42  ;;  %v919_v10 = vsub.f32 %v915_v44, %v884_v24 }
 0x21c   : > { %2692 = vpow2.f32 %v2565_v45  ;;  %v927_v49 = vmul.f32 %v924_v21, %v918_v46 }
 0x21d   : > { %2694 = vpow2.f32 %v2568_v48  ;;  %v928_v50 = vmul.f32 %v924_v21, %v919_v10 }
 0x21e   : > { %v3350_v7 = vadd.f32 %v933_v34, %v927_v49 }
 0x21f   : > { %v3353_v54 = vadd.f32 %v933_v34, %v928_v50 }
 0x220   : > { %v2566_v52 = vmul.f32 -1.442695, %v3350_v7 }
 0x221   : > { %v2567_v6 = vmul.f32 -1.442695, %v3353_v54 }
 0x222   : > { %v2693_v53 = vpop.eup %2692  ;;  %2696 = vpow2.f32 %v2566_v52 }
 0x223   : > { %v2695_v11 = vpop.eup %2694  ;;  %v951_v55 = vadd.f32 1.0, %v2693_v53 }
 0x224   : > { %v954_v57 = vadd.f32 1.0, %v2695_v11 }
 0x225   : > { %2698 = vrcp.f32 %v951_v55  ;;  %v966_v19 = vand.u32 2147483648, %v951_v55  ;;  %v964_v25 = vand.u32 2147483647, %v951_v55  ;;  %vm960_vm8 = vweird.f32 %v951_v55 }
 0x226   : > { %2700 = vrcp.f32 %v954_v57  ;;  %v1011_v26 = vand.u32 2147483648, %v954_v57  ;;  %v1009_v29 = vand.u32 2147483647, %v954_v57  ;;  %vm1005_vm10 = vweird.f32 %v954_v57 }
 0x227   : > { %2702 = vpow2.f32 %v2567_v6  ;;  %v967_v32 = vor.u32 1.1754944e-38, %v966_v19  ;;  %vm965_vm11 = vcmp.eq.f32.partialorder %v964_v25, 8.507059e+37 }
 0x228   : > { %v2697_v58 = vpop.eup %2696  ;;  %v1012_v37 = vor.u32 1.1754944e-38, %v1011_v26  ;;  %vm1010_vm13 = vcmp.eq.f32.partialorder %v1009_v29, 8.507059e+37 }
 0x229   : > { %v3356_v13 = vadd.f32 1.0, %v2697_v58 }
 0x22b   : > { %v2699_v12 = vpop.eup %2698  ;;  %2704 = vrcp.f32 %v3356_v13  ;;  %v981_v11 = vand.u32 2147483648, %v3356_v13  ;;  %vm975_vm15 = vweird.f32 %v3356_v13 }
 0x22c   : > { %v2701_v14 = vpop.eup %2700  ;;  %v956_v15 = vmul.f32 %v2699_v12, %v951_v55  ;;  %vm961_vm6 = vweird.f32 %v2699_v12  ;;  %v979_v55 = vand.u32 2147483647, %v3356_v13 }
 0x22d   : > { %v1001_v17 = vmul.f32 %v2701_v14, %v954_v57  ;;  %v2703_v22 = vpop.eup %2702  ;;  %vm1006_vm7 = vweird.f32 %v2701_v14  ;;  %vm962_vm9 = vmor %vm960_vm8, %vm961_vm6  ;;  %v982_v58 = vor.u32 1.1754944e-38, %v981_v11 }
 0x22e   : > { %v957_v18 = vsub.f32 1.0, %v956_v15  ;;  %v953_v34 = vadd.f32 1.0, %v2703_v22  ;;  %vm1007_vm12 = vmor %vm1005_vm10, %vm1006_vm7  ;;  %vm980_vm3 = vcmp.eq.f32.partialorder %v979_v55, 8.507059e+37 }
 0x22f   : > { %v1002_v21 = vsub.f32 1.0, %v1001_v17 }
 0x230   : > { %v958_v24 = vmul.f32 %v2699_v12, %v957_v18  ;;  %2706 = vrcp.f32 %v953_v34  ;;  %v996_v15 = vand.u32 2147483648, %v953_v34  ;;  %vm990_vm6 = vweird.f32 %v953_v34 }
 0x231   : > { %v1003_v28 = vmul.f32 %v2701_v14, %v1002_v21  ;;  %v2705_v40 = vpop.eup %2704  ;;  %v994_v17 = vand.u32 2147483647, %v953_v34 }
 0x232   : > { %v959_v30 = vadd.f32 %v2699_v12, %v958_v24  ;;  %v971_v10 = vmul.f32 %v2705_v40, %v3356_v13  ;;  %vm976_vm14 = vweird.f32 %v2705_v40  ;;  %v997_v19 = vor.u32 1.1754944e-38, %v996_v15 }
 0x233   : > { %v1004_v33 = vadd.f32 %v2701_v14, %v1003_v28  ;;  %vm977_vm2 = vmor %vm975_vm15, %vm976_vm14  ;;  %vm995_vm8 = vcmp.eq.f32.partialorder %v994_v17, 8.507059e+37  ;;  %v3493_v17 = vld [vmem:[%s4733_s2 + $0x8] sm:$0xff] }
 0x234   : > { %v963_v36 = vsel %vm962_vm9, %v2699_v12, %v959_v30 }
 0x235   : > { %v968_v41 = vsel %vm965_vm11, %v967_v32, %v963_v36  ;;  %v1008_v44 = vsel %vm1007_vm12, %v2701_v14, %v1004_v33  ;;  %v1037_v32 = vlaneseq }
 0x236   : > { %v3359_v45 = vmul.f32 %v968_v41, %v935_v38  ;;  %v1013_v46 = vsel %vm1010_vm13, %v1012_v37, %v1008_v44  ;;  %v972_v38 = vsub.f32 1.0, %v971_v10  ;;  %v2707_v49 = vpop.eup %2706  ;;  %v3453_v37 = vld [vmem:[%s4733_s2 + $0x18] sm:$0xff] }
 0x237   : > { %v3361_v48 = vmul.f32 %v1013_v46, %v938_v42  ;;  %v986_v42 = vmul.f32 %v2707_v49, %v953_v34  ;;  %vm991_vm4 = vweird.f32 %v2707_v49  ;;  %v3448_v36 = vand.u32 127, %v1037_v32 }
 0x238   : > { %1094 = vrot.lane.b32.xlu2 %v3359_v45, %s4681_s27  ;;  %v973_v50 = vmul.f32 %v2705_v40, %v972_v38  ;;  %vm992_vm7 = vmor %vm990_vm6, %vm991_vm4  ;;  %v3463_v44 = vperm.slane %v3453_v37, 7  ;;  %vm1430_vm4 = vcmask 261120  }
 0x239   : > { %1121 = vrot.lane.b32.xlu1 %v3361_v48, %s4673_s19  ;;  %1184 = vrot.lane.b32.xlu0 %v3361_v48, %s4671_s20  ;;  %v987_v53 = vsub.f32 1.0, %v986_v42  ;;  %vm1186_vm9 = vcmp.lt.s32.totalorder %v3448_v36, 111  ;;  %vm1165_vm10 = vcmp.lt.s32.totalorder %v3448_v36, 112  ;;  %vm1144_vm11 = vcmp.lt.s32.totalorder %v3448_v36, 113 }
 0x23a   : > { %v974_v52 = vadd.f32 %v2705_v40, %v973_v50  ;;  %4734 = vst [vmem:[#allocation10_spill] sm:$0xff] %v3463_v44  ;;  %vm1123_vm12 = vcmp.lt.s32.totalorder %v3448_v36, 127  ;;  %vm1081_vm13 = vcmp.lt.s32.totalorder %v3448_v36, 15  ;;  %vm1102_vm14 = vcmp.lt.s32.totalorder %v3448_v36, 1 }
 0x23b   : > { %v988_v6 = vmul.f32 %v2707_v49, %v987_v53  ;;  %v2687_v53 = vld [vmem:[%s4733_s2 + $0x20] ss:$0 sm:$0xff]  ;;  %vm1060_vm15 = vcmp.lt.s32.totalorder %v3448_v36, 16 }
 0x23c   : > { %v978_v57 = vsel %vm977_vm2, %v2705_v40, %v974_v52  ;;  %v2686_v40 = vld [vmem:[%s4733_s2 + $0x38] ss:$0 sm:$0xff]  ;;  %v3473_v52 = vld [vmem:[%s4733_s2] sm:$0xff]  ;;  %vm1039_vm2 = vcmp.lt.s32.totalorder %v3448_v36, 17 }
 0x23d   : > { %v983_v12 = vsel %vm980_vm3, %v982_v58, %v978_v57  ;;  %v989_v14 = vadd.f32 %v2707_v49, %v988_v6  ;;  %v3481_v55 = vperm.slane %v3473_v52, 7  ;;  %vm1199_vm3 = vcmask 588800  }
 0x23e   : > { %v3386_v13 = vmul.f32 %v983_v12, %v3350_v7 }
 0x23f   : > { %v993_v18 = vsel %vm992_vm7, %v2707_v49, %v989_v14  ;;  %4735 = vst [vmem:[#allocation11_spill] sm:$0xff] %v3481_v55 }
 0x240   : > { %1052 = vrot.lane.b32.xlu2 %v3359_v45, %s4689_s24  ;;  %v998_v21 = vsel %vm995_vm8, %v997_v19, %v993_v18  ;;  %v3498_v18 = vld [vmem:[%s4733_s2 + $0x10] sm:$0xff]  ;;  %v3501_v19 = vperm.slane %v3453_v37, 6 }
 0x241   : > { %1163 = vrot.lane.b32.xlu0 %v3361_v48, %s4675_s28  ;;  %1073 = vrot.lane.b32.xlu1 %v3359_v45, %s4687_s30  ;;  %v3395_v7 = vmul.f32 %v998_v21, %v3353_v54  ;;  %v1305_v54 = vld [vmem:[%s4661_s11 + $0x8] sm:$0xff] }
 0x242   : > { %4736 = vst [vmem:[#allocation12_spill] sm:$0xff] %v3501_v19  ;;  %v2688_v21 = vld [vmem:[%s4733_s2 + $0x28] ss:$0 sm:$0xff] }
 0x248   : > { %1157 = vrot.lane.b32.xlu2 %v3359_v45, %s4675_s28 }
 0x249   : > { %1142 = vrot.lane.b32.xlu0 %v3361_v48, %s4677_s29  ;;  %1178 = vrot.lane.b32.xlu1 %v3359_v45, %s4671_s20 }
 0x250   : > { %1159 = vrot.lane.b32.xlu2 %v3386_v13, %s4675_s28 }
 0x251   : > { %1029 = vrot.lane.b32.xlu0 %v3359_v45, %s4679_s26  ;;  %1180 = vrot.lane.b32.xlu1 %v3386_v13, %s4671_s20 }
 0x258   : > { %1161 = vrot.lane.b32.xlu2 %v3395_v7, %s4675_s28 }
 0x259   : > { %1136 = vrot.lane.b32.xlu0 %v3359_v45, %s4677_s29  ;;  %1182 = vrot.lane.b32.xlu1 %v3395_v7, %s4671_s20  ;;  %s4756_s20 = smov 127  }
 0x260   : > { %1140 = vrot.lane.b32.xlu2 %v3395_v7, %s4677_s29 }
 0x261   : > { %1096 = vrot.lane.b32.xlu0 %v3386_v13, %s4681_s27  ;;  %1138 = vrot.lane.b32.xlu1 %v3386_v13, %s4677_s29  ;;  %s4753_s29 = smov 17  }
 0x268   : > { %1119 = vrot.lane.b32.xlu2 %v3395_v7, %s4673_s19 }
 0x269   : > { %1098 = vrot.lane.b32.xlu0 %v3395_v7, %s4681_s27  ;;  %1117 = vrot.lane.b32.xlu1 %v3386_v13, %s4673_s19 }
 0x270   : > { %1075 = vrot.lane.b32.xlu2 %v3386_v13, %s4687_s30 }
 0x271   : > { %1054 = vrot.lane.b32.xlu0 %v3386_v13, %s4689_s24  ;;  %1077 = vrot.lane.b32.xlu1 %v3395_v7, %s4687_s30 }
 0x278   : > { %1056 = vrot.lane.b32.xlu2 %v3395_v7, %s4689_s24 }
 0x279   : > { %1100 = vrot.lane.b32.xlu0 %v3361_v48, %s4681_s27  ;;  %1031 = vrot.lane.b32.xlu1 %v3386_v13, %s4679_s26  ;;  %s516_s27 = sand.u32 1, %s2846_s22  }
 0x27a   : > { %s3865_s28 = sshll.u32 %s516_s27, 6 }
 0x280   : > { %1115 = vrot.lane.b32.xlu2 %v3359_v45, %s4673_s19  ;;  %s4755_s19 = smov 112  }
 0x281   : > { %1035 = vrot.lane.b32.xlu0 %v3361_v48, %s4679_s26  ;;  %1033 = vrot.lane.b32.xlu1 %v3395_v7, %s4679_s26  ;;  %s4754_s26 = smov 113  }
 0x288   : > { %1058 = vrot.lane.b32.xlu2 %v3361_v48, %s4689_s24  ;;  %s518_s24 = scalar_lea.vmem [#allocation2], %s3865_s28 }
 0x289   : > { %1682 = vperm.xlu0 %2683, %v1305_v54   ;;  %1079 = vrot.lane.b32.xlu1 %v3361_v48, %s4687_s30  ;;  %v2689_v54 = vld [vmem:[%s4733_s2 + $0x30] ss:$0 sm:$0xff]  ;;  %s4752_s30 = smov 1  }
 0x292   : > { %v3440_v22 = vpop.permute.xlu2 %1094 }
 0x29a   : > { %v3442_v24 = vpop.permute.xlu2 %1052 }
 0x2a2   : > { %v1158_v25 = vpop.permute.xlu2 %1157 }
 0x2aa   : > { %v1160_v26 = vpop.permute.xlu2 %1159 }
 0x2ab   : > { %v3444_v28 = vpop.permute.xlu1 %1121  ;;  %v1185_v29 = vpop.permute.xlu0 %1184  ;;  %v1168_v58 = vsel %vm1165_vm10, %v1158_v25, %v1160_v26 }
 0x2ac   : > { %v1174_v15 = vmul.f32 %v3481_v55, %v1168_v58  ;;  %v3539_v55 = vperm.slane %v3498_v18, 5 }
 0x2b2   : > { %v1162_v30 = vpop.permute.xlu2 %1161 }
 0x2b3   : > { %v1164_v33 = vpop.permute.xlu0 %1163  ;;  %v3446_v34 = vpop.permute.xlu1 %1073 }
 0x2b4   : > { %v1169_v38 = vsel %vm1165_vm10, %v1164_v33, %v1158_v25  ;;  %v3510_v25 = vperm.slane %v3493_v17, 7 }
 0x2b5   : > { %v1177_v42 = vmul.f32 %v3463_v44, %v1169_v38  ;;  %v3521_v38 = vperm.slane %v3498_v18, 6 }
 0x2ba   : > { %v3459_v41 = vpop.permute.xlu2 %1140 }
 0x2bb   : > { %v1143_v46 = vpop.permute.xlu0 %1142  ;;  %v1179_v10 = vpop.permute.xlu1 %1178 }
 0x2bc   : > { %v1190_v49 = vsel %vm1186_vm9, %v1185_v29, %v1179_v10  ;;  %v1145_v44 = vsel %vm1144_vm11, %v3459_v41, %v1143_v46 }
 0x2bd   : > { %v1198_v50 = vmul.f32 %v2686_v40, %v1190_v49  ;;  %v3515_v40 = vperm.slane %v3498_v18, 7 }
 0x2bf   : > { %1282 = vmatpush.msrb.mxu0 %v1198_v50 }
 0x2c1   : > { %1283 = vmatpush.msrb.mxu0 %v1177_v42  ;;  %v1166_v42 = vsel %vm1165_vm10, %v1162_v30, %v1164_v33 }
 0x2c2   : > { %v3478_v11 = vpop.permute.xlu2 %1119  ;;  %v1176_v33 = vmul.f32 %v3515_v40, %v1166_v42 }
 0x2c3   : > { %v3483_v57 = vpop.permute.xlu0 %1029  ;;  %v1181_v6 = vpop.permute.xlu1 %1180 }
 0x2c4   : > { %v1189_v12 = vsel %vm1186_vm9, %v1179_v10, %v1181_v6  ;;  %v1167_v10 = vsel %vm1165_vm10, %v1160_v26, %v1162_v30 }
 0x2c5   : > { %v1195_v14 = vmul.f32 %v2687_v53, %v1189_v12  ;;  %v1175_v30 = vmul.f32 %v3510_v25, %v1167_v10 }
 0x2c7   : > { %1213 = vmatpush.msra.mxu1 %v1195_v14 }
 0x2c9   : > { %1214 = vmatpush.msra.mxu1 %v1174_v15 }
 0x2ca   : > { %v3512_v32 = vpop.permute.xlu2 %1075 }
 0x2cb   : > { %v1137_v49 = vpop.permute.xlu0 %1136  ;;  %v1183_v50 = vpop.permute.xlu1 %1182 }
 0x2cc   : > { %v1148_v53 = vsel %vm1144_vm11, %v1143_v46, %v1137_v49  ;;  %v1187_v58 = vsel %vm1186_vm9, %v1183_v50, %v1185_v29  ;;  %v1188_v12 = vsel %vm1186_vm9, %v1181_v6, %v1183_v50  ;;  %v1124_v29 = vsel %vm1123_vm12, %v3478_v11, %v3444_v28 }
 0x2cd   : > { %v1156_v26 = vmul.f32 %v3501_v19, %v1148_v53  ;;  %v1196_v14 = vmul.f32 %v2688_v21, %v1188_v12  ;;  %v1197_v15 = vmul.f32 %v2689_v54, %v1187_v58  ;;  %v1155_v6 = vmul.f32 %v3521_v38, %v1145_v44 }
 0x2ce   : > { %v3547_v46 = vperm.slane %v3473_v52, 6  ;;  %v3550_v21 = vperm.slane %v3493_v17, 6  ;;  %v1134_v10 = vmul.f32 %v3539_v55, %v1124_v29 }
 0x2cf   : > { %1236 = vmatpush.msra.mxu2 %v1196_v14  ;;  %1259 = vmatpush.msra.mxu3 %v1197_v15  ;;  %v3567_v14 = vperm.slane %v3498_v18, 3 }
 0x2d0   : > { %1284 = vmatpush.msrb.mxu0 %v1156_v26  ;;  %v3564_v26 = vperm.slane %v3453_v37, 5 }
 0x2d1   : > { %1237 = vmatpush.msra.mxu2 %v1175_v30  ;;  %1260 = vmatpush.msra.mxu3 %v1176_v33  ;;  %4738 = vst [vmem:[#allocation14_spill] sm:$0xff] %v3567_v14 }
 0x2d2   : > { %v3552_v54 = vpop.permute.xlu2 %1056  ;;  %4737 = vst [vmem:[#allocation13_spill] sm:$0xff] %v3564_v26 }
 0x2d3   : > { %v1097_v50 = vpop.permute.xlu0 %1096  ;;  %v1139_v42 = vpop.permute.xlu1 %1138  ;;  %1261 = vmatpush.msra.mxu3 %v1155_v6 }
 0x2d4   : > { %v1146_v53 = vsel %vm1144_vm11, %v1139_v42, %v3459_v41  ;;  %v1147_v44 = vsel %vm1144_vm11, %v1137_v49, %v1139_v42  ;;  %v3570_v41 = vperm.slane %v3493_v17, 5  ;;  %v3573_v49 = vperm.slane %v3473_v52, 5 }
 0x2d5   : > { %v1153_v58 = vmul.f32 %v3547_v46, %v1147_v44  ;;  %v1154_v12 = vmul.f32 %v3550_v21, %v1146_v53  ;;  %1262 = vmatpush.msra.mxu3 %v1134_v10  ;;  %v3589_v53 = vperm.slane %v3493_v17, 3 }
 0x2d7   : > { %1215 = vmatpush.msra.mxu1 %v1153_v58  ;;  %1238 = vmatpush.msra.mxu2 %v1154_v12  ;;  %v1105_v12 = vsel %vm1102_vm14, %v3440_v22, %v1097_v50 }
 0x2d8   : > { %1263 = vmatpush.msra.mxu3 %v3395_v7 }
 0x2da   : > { %v1116_v15 = vpop.permute.xlu2 %1115 }
 0x2db   : > { %v1099_v30 = vpop.permute.xlu0 %1098  ;;  %v1118_v33 = vpop.permute.xlu1 %1117  ;;  %v1127_v7 = vsel %vm1123_vm12, %v3444_v28, %v1116_v15 }
 0x2dc   : > { %v1104_v29 = vsel %vm1102_vm14, %v1097_v50, %v1099_v30  ;;  %v1125_v6 = vsel %vm1123_vm12, %v1118_v33, %v3478_v11  ;;  %v1126_v10 = vsel %vm1123_vm12, %v1116_v15, %v1118_v33  ;;  %v1135_v42 = vmul.f32 %v3564_v26, %v1127_v7 }
 0x2dd   : > { %v1113_v44 = vmul.f32 %v3567_v14, %v1104_v29  ;;  %v1133_v58 = vmul.f32 %v3570_v41, %v1125_v6  ;;  %v1132_v28 = vmul.f32 %v3573_v49, %v1126_v10  ;;  %v3598_v11 = vperm.slane %v3493_v17, 2 }
 0x2de   : > { %1285 = vmatpush.msrb.mxu0 %v1135_v42  ;;  %v1084_v15 = vsel %vm1081_vm13, %v3446_v34, %v3512_v32  ;;  %v1112_v33 = vmul.f32 %v3589_v53, %v1105_v12  ;;  %v3610_v50 = vperm.slane %v3493_v17, 1  ;;  %v3613_v7 = vperm.slane %v3498_v18, 2 }
 0x2df   : > { %4739 = vst [vmem:[#allocation15_spill] sm:$0xff] %v3598_v11  ;;  %1216 = vmatpush.msra.mxu1 %v1132_v28  ;;  %1239 = vmatpush.msra.mxu2 %v1133_v58  ;;  %v1091_v29 = vmul.f32 %v3598_v11, %v1084_v15  ;;  %v3617_v6 = vperm.slane %v3498_v18, 1  ;;  %v3632_v12 = vperm.slane %v3473_v52, 3  ;;  %v3635_v15 = vperm.slane %v3453_v37, 3 }
 0x2e0   : > { %1264 = vmatpush.msra.mxu3 %v1113_v44  ;;  %1286 = vmatpush.msrb.mxu0 %v3361_v48  ;;  %4740 = vst [vmem:[#allocation16_spill] sm:$0xff] %v3610_v50 }
 0x2e1   : > { %1217 = vmatpush.msra.mxu1 %v3359_v45  ;;  %1240 = vmatpush.msra.mxu2 %v3386_v13  ;;  %4741 = vst [vmem:[#allocation17_spill] sm:$0xff] %v3613_v7 }
 0x2e2   : > { %4742 = vst [vmem:[#allocation18_spill] sm:$0xff] %v3617_v6 }
 0x2e3   : > { %v1055_v48 = vpop.permute.xlu0 %1054  ;;  %v1078_v10 = vpop.permute.xlu1 %1077  ;;  %1241 = vmatpush.msra.mxu2 %v1112_v33  ;;  %4743 = vst [vmem:[#allocation19_spill] sm:$0xff] %v3635_v15 }
 0x2e4   : > { %v1062_v45 = vsel %vm1060_vm15, %v1055_v48, %v3552_v54  ;;  %v1063_v13 = vsel %vm1060_vm15, %v3442_v24, %v1055_v48  ;;  %v1083_v42 = vsel %vm1081_vm13, %v3512_v32, %v1078_v10  ;;  %v3639_v32 = vperm.slane %v3493_v17, 0 }
 0x2e5   : > { %v1070_v44 = vmul.f32 %v3610_v50, %v1063_v13  ;;  %v1092_v58 = vmul.f32 %v3613_v7, %v1083_v42  ;;  %1242 = vmatpush.msra.mxu2 %v1091_v29  ;;  %v1071_v28 = vmul.f32 %v3617_v6, %v1062_v45 }
 0x2e6   : > { %4744 = vst [vmem:[#allocation20_spill] sm:$0xff] %v3639_v32 }
 0x2e7   : > { %1243 = vmatpush.msra.mxu2 %v1070_v44  ;;  %1265 = vmatpush.msra.mxu3 %v1092_v58  ;;  %v1019_v58 = vld [vmem:[%s4658_s8] sm:$0xff] }
 0x2e9   : > { %1266 = vmatpush.msra.mxu3 %v1071_v28 }
 0x2eb   : > { %v1101_v33 = vpop.permute.xlu0 %1100  ;;  %v1032_v48 = vpop.permute.xlu1 %1031 }
 0x2ec   : > { %v1103_v29 = vsel %vm1102_vm14, %v1099_v30, %v1101_v33  ;;  %v1106_v45 = vsel %vm1102_vm14, %v1101_v33, %v3440_v22  ;;  %v1042_v13 = vsel %vm1039_vm2, %v3483_v57, %v1032_v48  ;;  %v3657_v22 = vperm.slane %v3498_v18, 0  ;;  %v2744_v30 = vld [vmem:[%s4730_s3 + $0xf8] sm:$0xff] }
 0x2ed   : > { %v1111_v42 = vmul.f32 %v3632_v12, %v1106_v45  ;;  %v1114_v44 = vmul.f32 %v3635_v15, %v1103_v29  ;;  %v1049_v17 = vmul.f32 %v3639_v32, %v1042_v13  ;;  %v3669_v45 = vld [vmem:[%s4658_s8 + $0x8] sm:$0xff]  ;;  %v3677_v18 = vperm.slane %v3473_v52, 2 }
 0x2ee   : > { %4745 = vst [vmem:[#allocation21_spill] sm:$0xff] %v3657_v22  ;;  %v3690_v13 = vperm.slane %v3453_v37, 1 }
 0x2ef   : > { %1218 = vmatpush.msra.mxu1 %v1111_v42  ;;  %1244 = vmatpush.msra.mxu2 %v1049_v17  ;;  %v2746_v17 = vld [vmem:[%s4730_s3 + $0x170] sm:$0xff] }
 0x2f0   : > { %1287 = vmatpush.msrb.mxu0 %v1114_v44  ;;  %2571 = vmatmul.msk.f32.vlgmr.msra.gmra.mxu2 %vm1199_vm3, %v1019_v58  ;;  %4747 = vst [vmem:[#allocation23_spill] sm:$0xff] %v3690_v13 }
 0x2f1   : > { %1343 = vmatpush.msrb.mxu2 %v2744_v30 }
 0x2f3   : > { %v1034_v28 = vpop.permute.xlu1 %1033  ;;  %1344 = vmatpush.msrb.mxu2 %v3037_v16  ;;  %v1059_v16 = vpop.permute.xlu2 %1058 }
 0x2f4   : > { %v1041_v33 = vsel %vm1039_vm2, %v1032_v48, %v1034_v28  ;;  %v3680_v48 = vperm.slane %v3453_v37, 2  ;;  %v1036_v42 = vpop.permute.xlu0 %1035  ;;  %v1064_v30 = vsel %vm1060_vm15, %v1059_v16, %v3442_v24  ;;  %v2747_v24 = vld [vmem:[%s4730_s3 + $0x168] sm:$0xff] }
 0x2f5   : > { %v1050_v29 = vmul.f32 %v3657_v22, %v1041_v33  ;;  %1345 = vmatpush.msrb.mxu2 %v3052_v20  ;;  %v2745_v20 = vld [vmem:[%s4730_s3 + $0x178] sm:$0xff] }
 0x2f6   : > { %4746 = vst [vmem:[#allocation22_spill] sm:$0xff] %v3680_v48 }
 0x2f7   : > { %1267 = vmatpush.msra.mxu3 %v1050_v29  ;;  %1346 = vmatpush.msrb.mxu2 %v3063_v23  ;;  %v3687_v23 = vperm.slane %v3473_v52, 1  ;;  %v3708_v29 = vperm.slane %v3473_v52, 0  ;;  %v1040_v52 = vsel %vm1039_vm2, %v1034_v28, %v1036_v42  ;;  %v2750_v28 = vld [vmem:[%s4730_s3 + $0x1f8] sm:$0xff] }
 0x2f8   : > { %2572 = vmatmul.msk.f32.gmra.mxu2 %vm1199_vm3, %v3669_v45  ;;  %2573 = vmatmul.msk.f32.vlgmr.msra.gmra.mxu3 %vm1199_vm3, %v1019_v58 }
 0x2f9   : > { %1347 = vmatpush.msrb.mxu2 %v3078_v27  ;;  %1372 = vmatpush.msrb.mxu3 %v2745_v20  ;;  %v1061_v27 = vsel %vm1060_vm15, %v3552_v54, %v1059_v16  ;;  %v3711_v20 = vperm.slane %v3453_v37, 0  ;;  %v1069_v37 = vmul.f32 %v3687_v23, %v1064_v30  ;;  %v2757_v30 = vld [vmem:[%s4730_s3 + $0x148] sm:$0xff] }
 0x2fb   : > { %v1080_v44 = vpop.permute.xlu1 %1079  ;;  %1348 = vmatpush.msrb.mxu2 %v3093_v31  ;;  %1373 = vmatpush.msrb.mxu3 %v2746_v17  ;;  %4748 = vst [vmem:[#allocation24_spill] sm:$0xff] %v3711_v20  ;;  %v1051_v16 = vmul.f32 %v3711_v20, %v1040_v52  ;;  %v2768_v52 = vld [vmem:[%s4730_s3 + $0x1c8] sm:$0xff] }
 0x2fc   : > { %v1082_v33 = vsel %vm1081_vm13, %v1078_v10, %v1080_v44  ;;  %v1085_v31 = vsel %vm1081_vm13, %v1080_v44, %v3446_v34  ;;  %v1043_v34 = vsel %vm1039_vm2, %v1036_v42, %v3483_v57  ;;  %v1072_v10 = vmul.f32 %v3690_v13, %v1061_v27  ;;  %v2748_v57 = vld [vmem:[%s4730_s3 + $0x160] sm:$0xff]  ;;  %v2753_v42 = vld [vmem:[%s4730_s3 + $0x1f0] sm:$0xff]  ;;  %v2756_v27 = vld [vmem:[%s4730_s3 + $0x1e8] sm:$0xff] }
 0x2fd   : > { %v1090_v17 = vmul.f32 %v3677_v18, %v1085_v31  ;;  %v1093_v54 = vmul.f32 %v3680_v48, %v1082_v33  ;;  %1349 = vmatpush.msrb.mxu2 %v3108_v35  ;;  %1374 = vmatpush.msrb.mxu3 %v2747_v24  ;;  %v1048_v35 = vmul.f32 %v3708_v29, %v1043_v34  ;;  %v2754_v44 = vld [vmem:[%s4730_s3 + $0x150] sm:$0xff]  ;;  %v2759_v33 = vld [vmem:[%s4730_s3 + $0x1e0] sm:$0xff]  ;;  %v2318_v20 = vld [vmem:[%s4665_s15 + $0x8] sm:$0xff] }
 0x2fe   : > { %v2761_v31 = vld [vmem:[%s4730_s3 + $0x140] sm:$0xff]  ;;  %v2765_v24 = vld [vmem:[%s4730_s3 + $0x1d0] sm:$0xff] }
 0x2ff   : > { %1219 = vmatpush.msra.mxu1 %v1090_v17  ;;  %1288 = vmatpush.msrb.mxu0 %v1093_v54  ;;  %v2762_v17 = vld [vmem:[%s4730_s3 + $0x1d8] sm:$0xff]  ;;  %v2767_v34 = vld [vmem:[%s4730_s3 + $0x130] sm:$0xff]  ;;  %v2317_v13 = vld [vmem:[%s4665_s15] sm:$0xff] }
 0x300   : > { %2574 = vmatmul.msk.f32.gmra.mxu3 %vm1199_vm3, %v3669_v45  ;;  %1350 = vmatpush.msrb.mxu2 %v3124_v39  ;;  %v2749_v39 = vld [vmem:[%s4730_s3 + $0x78] sm:$0xff] }
 0x301   : > { %1220 = vmatpush.msra.mxu1 %v1069_v37  ;;  %1289 = vmatpush.msrb.mxu0 %v1072_v10  ;;  %v2764_v54 = vld [vmem:[%s4730_s3 + $0x138] sm:$0xff]  ;;  %v2770_v37 = vld [vmem:[%s4730_s3 + $0x128] sm:$0xff]  ;;  %v2771_v10 = vld [vmem:[%s4730_s3 + $0x1c0] sm:$0xff] }
 0x302   : > { %1375 = vmatpush.msrb.mxu3 %v2748_v57  ;;  %1351 = vmatpush.msrb.mxu2 %v3145_v43  ;;  %v2751_v43 = vld [vmem:[%s4730_s3 + $0x158] sm:$0xff]  ;;  %v2775_v57 = vld [vmem:[%s4730_s3 + $0x30] sm:$0xff] }
 0x303   : > { %1221 = vmatpush.msra.mxu1 %v1048_v35  ;;  %1290 = vmatpush.msrb.mxu0 %v1051_v16  ;;  %v2773_v35 = vld [vmem:[%s4730_s3 + $0x120] sm:$0xff]  ;;  %v2774_v16 = vld [vmem:[%s4730_s3 + $0x1b8] sm:$0xff] }
 0x304   : > { %2569 = vmatmul.msk.f32.vlgmr.msra.gmra.mxu1 %vm1199_vm3, %v1019_v58  ;;  %2575 = vmatmul.msk.f32.vlgmr.msrb.gmra.mxu0 %vm1199_vm3, %v1019_v58  ;;  %v2752_v58 = vld [vmem:[%s4730_s3 + $0x70] sm:$0xff] }
 0x305   : > { %1314 = vmatpush.msrb.mxu1 %v2749_v39  ;;  %1401 = vmatpush.msra.mxu0 %v2750_v28  ;;  %v2777_v39 = vld [vmem:[%s4730_s3 + $0x1b0] sm:$0xff]  ;;  %v2778_v28 = vld [vmem:[%s4730_s3 + $0x28] sm:$0xff] }
 0x306   : > { %1376 = vmatpush.msrb.mxu3 %v2751_v43  ;;  %1352 = vmatpush.msrb.mxu2 %v3160_v47  ;;  %v2755_v47 = vld [vmem:[%s4730_s3 + $0x68] sm:$0xff] }
 0x307   : > { %1315 = vmatpush.msrb.mxu1 %v2752_v58  ;;  %1402 = vmatpush.msra.mxu0 %v2753_v42  ;;  %v2779_v43 = vld [vmem:[%s4730_s3 + $0x1a8] sm:$0xff]  ;;  %v2780_v58 = vld [vmem:[%s4730_s3 + $0x20] sm:$0xff] }
 0x308   : > { %1377 = vmatpush.msrb.mxu3 %v2754_v44  ;;  %1353 = vmatpush.msrb.mxu2 %v3181_v51  ;;  %v2758_v51 = vld [vmem:[%s4730_s3 + $0x60] sm:$0xff]  ;;  %v2783_v44 = vld [vmem:[%s4730_s3 + $0x198] sm:$0xff] }
 0x309   : > { %1316 = vmatpush.msrb.mxu1 %v2755_v47  ;;  %1403 = vmatpush.msra.mxu0 %v2756_v27  ;;  %v2781_v42 = vld [vmem:[%s4730_s3 + $0x1a0] sm:$0xff] }
 0x30a   : > { %1378 = vmatpush.msrb.mxu3 %v2757_v30  ;;  %1354 = vmatpush.msrb.mxu2 %v3199_v56  ;;  %v2760_v56 = vld [vmem:[%s4730_s3 + $0x58] sm:$0xff]  ;;  %v1024_v30 = vld [vmem:[%s518_s24 + $0x18] sm:$0xff] }
 0x30b   : > { %1317 = vmatpush.msrb.mxu1 %v2758_v51  ;;  %1404 = vmatpush.msra.mxu0 %v2759_v33 }
 0x30c   : > { %2570 = vmatmul.msk.f32.gmra.mxu1 %vm1199_vm3, %v3669_v45  ;;  %2576 = vmatmul.msk.f32.gmra.mxu0 %vm1199_vm3, %v3669_v45  ;;  %v2763_v45 = vld [vmem:[%s4730_s3 + $0x50] sm:$0xff] }
 0x30d   : > { %1318 = vmatpush.msrb.mxu1 %v2760_v56  ;;  %1379 = vmatpush.msrb.mxu3 %v2761_v31  ;;  %v1027_v56 = vld [vmem:[%s518_s24 + $0x30] sm:$0xff] }
 0x30e   : > { %1405 = vmatpush.msra.mxu0 %v2762_v17  ;;  %1355 = vmatpush.msrb.mxu2 %v3211_v59  ;;  %v2766_v59 = vld [vmem:[%s4730_s3 + $0x48] sm:$0xff] }
 0x30f   : > { %1319 = vmatpush.msrb.mxu1 %v2763_v45  ;;  %1380 = vmatpush.msrb.mxu3 %v2764_v54 }
 0x310   : > { %1406 = vmatpush.msra.mxu0 %v2765_v24  ;;  %1356 = vmatpush.msrb.mxu2 %v3233_v63  ;;  %v2769_v63 = vld [vmem:[%s4730_s3 + $0x40] sm:$0xff] }
 0x311   : > { %1320 = vmatpush.msrb.mxu1 %v2766_v59  ;;  %1381 = vmatpush.msrb.mxu3 %v2767_v34  ;;  %v1025_v59 = vld [vmem:[%s518_s24 + $0x20] sm:$0xff]  ;;  %v1028_v34 = vld [vmem:[%s518_s24 + $0x38] sm:$0xff] }
 0x312   : > { %1407 = vmatpush.msra.mxu0 %v2768_v52  ;;  %1357 = vmatpush.msrb.mxu2 %v3261_v3  ;;  %v2772_v3 = vld [vmem:[%s4730_s3 + $0x38] sm:$0xff] }
 0x313   : > { %1321 = vmatpush.msrb.mxu1 %v2769_v63  ;;  %1382 = vmatpush.msrb.mxu3 %v2770_v37 }
 0x314   : > { %1408 = vmatpush.msra.mxu0 %v2771_v10  ;;  %1358 = vmatpush.msrb.mxu2 %v3293_v9  ;;  %v2776_v9 = vld [vmem:[%s4730_s3 + $0x118] sm:$0xff] }
 0x315   : > { %1322 = vmatpush.msrb.mxu1 %v2772_v3  ;;  %1383 = vmatpush.msrb.mxu3 %v2773_v35 }
 0x316   : > { %1409 = vmatpush.msra.mxu0 %v2774_v16 }
 0x317   : > { %1323 = vmatpush.msrb.mxu1 %v2775_v57  ;;  %1384 = vmatpush.msrb.mxu3 %v2776_v9 }
 0x318   : > { %1410 = vmatpush.msra.mxu0 %v2777_v39 }
 0x319   : > { %1324 = vmatpush.msrb.mxu1 %v2778_v28  ;;  %1385 = vmatpush.msrb.mxu3 %v3218_v60  ;;  %v2782_v60 = vld [vmem:[%s4730_s3 + $0x18] sm:$0xff] }
 0x31a   : > { %1411 = vmatpush.msra.mxu0 %v2779_v43 }
 0x31b   : > { %1325 = vmatpush.msrb.mxu1 %v2780_v58  ;;  %1386 = vmatpush.msrb.mxu3 %v3239_v0  ;;  %v1022_v0 = vld [vmem:[%s518_s24 + $0x8] sm:$0xff] }
 0x31c   : > { %1412 = vmatpush.msra.mxu0 %v2781_v42 }
 0x31d   : > { %1326 = vmatpush.msrb.mxu1 %v2782_v60  ;;  %1387 = vmatpush.msrb.mxu3 %v3268_v4 }
 0x31e   : > { %1413 = vmatpush.msra.mxu0 %v2783_v44 }
 0x31f   : > { %1327 = vmatpush.msrb.mxu1 %v3228_v62  ;;  %v1023_v62 = vld [vmem:[%s518_s24 + $0x10] sm:$0xff] }
 0x320   : > { %1414 = vmatpush.msra.mxu0 %v3223_v61  ;;  %v1026_v61 = vld [vmem:[%s518_s24 + $0x28] sm:$0xff] }
 0x321   : > { %1328 = vmatpush.msrb.mxu1 %v3256_v2 }
 0x322   : > { %1415 = vmatpush.msra.mxu0 %v3244_v1 }
 0x323   : > { %1329 = vmatpush.msrb.mxu1 %v3288_v8 }
 0x324   : > { %1416 = vmatpush.msra.mxu0 %v3273_v5  ;;  %v1021_v5 = vld [vmem:[%s518_s24] sm:$0xff]  ;;  %s4751_s24 = smov 15  }
 0x373   : > { %v1246_v4 = vpop.f32.mrf.mxu2 }
 0x374   : > { %v3868_v47 = vadd.f32 %v1246_v4, %v1022_v0 }
 0x376   : > { %1359 = vmatmul.f32.vlgmr.msrb.gmra.mxu2 %v3868_v47  ;;  %v1307_v24 = vmul.f32 %v3868_v47, %v3868_v47 }
 0x37b   : > { %v1249_v2 = vpop.f32.mrf.mxu2  ;;  %v1269_v1 = vpop.f32.mrf.mxu3 }
 0x37c   : > { %v3871_v27 = vadd.f32 %v1249_v2, %v1026_v61  ;;  %v3873_v8 = vadd.f32 %v1269_v1, %v1023_v62 }
 0x37e   : > { %1362 = vmatmul.f32.gmra.mxu2 %v3871_v27  ;;  %1388 = vmatmul.f32.vlgmr.msrb.gmra.mxu3 %v3873_v8  ;;  %v1311_v3 = vmul.f32 %v3871_v27, %v3871_v27  ;;  %v1308_v35 = vmul.f32 %v3873_v8, %v3873_v8 }
 0x381   : > { %v1223_v51 = vpop.f32.mrf.mxu1  ;;  %v1292_v33 = vpop.f32.mrf.mxu0 }
 0x382   : > { %v3877_v31 = vadd.f32 %v1223_v51, %v1021_v5  ;;  %v3879_v17 = vadd.f32 %v1292_v33, %v1024_v30 }
 0x383   : > { %v1272_v45 = vpop.f32.mrf.mxu3 }
 0x384   : > { %v3881_v54 = vadd.f32 %v1272_v45, %v1027_v56  ;;  %1330 = vmatmul.f32.vlgmr.msrb.gmra.mxu1 %v3877_v31  ;;  %1417 = vmatmul.f32.vlgmr.msra.gmra.mxu0 %v3879_v17  ;;  %v1306_v16 = vmul.f32 %v3877_v31, %v3877_v31  ;;  %v1309_v57 = vmul.f32 %v3879_v17, %v3879_v17 }
 0x386   : > { %1365 = vmatmul.f32.gmra.mxu2 %v1307_v24  ;;  %1391 = vmatmul.f32.gmra.mxu3 %v3881_v54  ;;  %v1312_v9 = vmul.f32 %v3881_v54, %v3881_v54 }
 0x389   : > { %v1226_v52 = vpop.f32.mrf.mxu1  ;;  %v1295_v63 = vpop.f32.mrf.mxu0 }
 0x38a   : > { %v3888_v37 = vadd.f32 %v1226_v52, %v1025_v59  ;;  %v3890_v10 = vadd.f32 %v1295_v63, %v1028_v34 }
 0x38c   : > { %1333 = vmatmul.f32.gmra.mxu1 %v3888_v37  ;;  %1420 = vmatmul.f32.gmra.mxu0 %v3890_v10  ;;  %v1310_v39 = vmul.f32 %v3888_v37, %v3888_v37  ;;  %v1313_v28 = vmul.f32 %v3890_v10, %v3890_v10 }
 0x38e   : > { %1368 = vmatmul.f32.gmra.mxu2 %v1311_v3  ;;  %1394 = vmatmul.f32.gmra.mxu3 %v1308_v35 }
 0x394   : > { %1336 = vmatmul.f32.gmra.mxu1 %v1306_v16  ;;  %1423 = vmatmul.f32.gmra.mxu0 %v1309_v57 }
 0x396   : > { %1397 = vmatmul.f32.gmra.mxu3 %v1312_v9 }
 0x39c   : > { %1339 = vmatmul.f32.gmra.mxu1 %v1310_v39  ;;  %1426 = vmatmul.f32.gmra.mxu0 %v1313_v28  ;;  %v1298_v28 = vld [vmem:[%s4659_s9] sm:$0xff] }
 0x3f9   : > { %v1360_v43 = vpop.f32.mrf.mxu2 }
 0x401   : > { %v1331_v58 = vpop.f32.mrf.mxu1  ;;  %v1389_v42 = vpop.f32.mrf.mxu3 }
 0x402   : > { %v1418_v60 = vpop.f32.mrf.mxu0  ;;  %v1363_v44 = vpop.f32.mrf.mxu2  ;;  %v1361_v59 = vadd.f32 %v1360_v43, %v1331_v58  ;;  %v1299_v43 = vld [vmem:[%s4659_s9 + $0x8] sm:$0xff]  ;;  %v1300_v58 = vld [vmem:[%s4659_s9 + $0x10] sm:$0xff] }
 0x404   : > { %v1390_v16 = vadd.f32 %v1389_v42, %v1361_v59  ;;  %v1301_v42 = vld [vmem:[%s4659_s9 + $0x18] sm:$0xff] }
 0x406   : > { %v1419_v39 = vadd.f32 %v1418_v60, %v1390_v16  ;;  %v1302_v16 = vld [vmem:[%s4660_s10] sm:$0xff] }
 0x407   : > { %1659 = vperm.xlu2 %2685, %v1302_v16  }
 0x409   : > { %v1334_v0 = vpop.f32.mrf.mxu1  ;;  %v1392_v4 = vpop.f32.mrf.mxu3 }
 0x40a   : > { %v1421_v61 = vpop.f32.mrf.mxu0  ;;  %v1366_v62 = vpop.f32.mrf.mxu2  ;;  %v1364_v56 = vadd.f32 %v1363_v44, %v1334_v0  ;;  %v1504_v0 = vld.sshfl [vmem:[#allocation1 + $0x18] sm:$0xff pattern:$0x73625140] }
 0x40c   : > { %v1393_v3 = vadd.f32 %v1392_v4, %v1364_v56  ;;  %v1501_v4 = vld.sshfl [vmem:[#allocation1] sm:$0xff pattern:$0x73625140] }
 0x40d   : > { %2581 = vmatpush.msk.msra.mxu2 %vm812_vm1, %v1501_v4 }
 0x40e   : > { %v1422_v9 = vadd.f32 %v1421_v61, %v1393_v3  ;;  %v1502_v61 = vld.sshfl [vmem:[#allocation1 + $0x8] sm:$0xff pattern:$0x73625140] }
 0x40f   : > { %2586 = vmatpush.msk.msra.mxu3 %vm812_vm1, %v1502_v61 }
 0x411   : > { %v1337_v2 = vpop.f32.mrf.mxu1  ;;  %v1395_v1 = vpop.f32.mrf.mxu3 }
 0x412   : > { %v1424_v5 = vpop.f32.mrf.mxu0  ;;  %v1367_v30 = vadd.f32 %v1366_v62, %v1337_v2  ;;  %v1369_v51 = vpop.f32.mrf.mxu2  ;;  %v1503_v62 = vld.sshfl [vmem:[#allocation1 + $0x10] sm:$0xff pattern:$0x73625140] }
 0x413   : > { %2591 = vmatpush.msk.msrb.mxu0 %vm812_vm1, %v1503_v62 }
 0x414   : > { %v1396_v34 = vadd.f32 %v1395_v1, %v1367_v30 }
 0x416   : > { %v1425_v57 = vadd.f32 %v1424_v5, %v1396_v34 }
 0x419   : > { %v1340_v33 = vpop.f32.mrf.mxu1  ;;  %v1398_v24 = vpop.f32.mrf.mxu3 }
 0x41a   : > { %v1370_v45 = vadd.f32 %v1369_v51, %v1340_v33  ;;  %v1427_v63 = vpop.f32.mrf.mxu0 }
 0x41c   : > { %v1399_v52 = vadd.f32 %v1398_v24, %v1370_v45  ;;  %v1303_v45 = vld [vmem:[%s4660_s10 + $0x8] sm:$0xff] }
 0x41d   : > { %1664 = vperm.xlu1 %2684, %v1303_v45  }
 0x41e   : > { %v1428_v35 = vadd.f32 %v1427_v63, %v1399_v52 }
 0x420   : > { %1455 = vmatpush.msra.mxu1 %v1428_v35  ;;  %v1304_v35 = vld [vmem:[%s4661_s11] sm:$0xff] }
 0x422   : > { %1456 = vmatpush.msra.mxu1 %v1425_v57 }
 0x424   : > { %1457 = vmatpush.msra.mxu1 %v1422_v9 }
 0x425   : > { %1677 = vperm.xlu1 %2684, %v1304_v35  }
 0x426   : > { %1458 = vmatpush.msra.mxu1 %v1419_v39 }
 0x427   : > { %2577 = vmatmul.msk.f32.vlgmr.msra.gmra.mxu1 %vm1430_vm4, %v1298_v28 }
 0x428   : > { %2596 = vmatpush.msk.msrb.mxu1 %vm812_vm1, %v1504_v0 }
 0x42f   : > { %2578 = vmatmul.msk.f32.gmra.mxu1 %vm1430_vm4, %v1299_v43 }
 0x437   : > { %2579 = vmatmul.msk.f32.gmra.mxu1 %vm1430_vm4, %v1300_v58 }
 0x43f   : > { %2580 = vmatmul.msk.f32.gmra.mxu1 %vm1430_vm4, %v1301_v42 }
 0x4a4   : > { %v1460_v60 = vpop.f32.mrf.mxu1 }
 0x4a5   : > { %v1472_v2 = vmul.f32 %v1460_v60, %v1460_v60 }
 0x4ac   : > { %v1463_v44 = vpop.f32.mrf.mxu1 }
 0x4ad   : > { %v1473_v51 = vmul.f32 %v1463_v44, %v1463_v44 }
 0x4b4   : > { %v1466_v1 = vpop.f32.mrf.mxu1 }
 0x4b5   : > { %v1474_v5 = vsub.f32 %v1466_v1, %v1472_v2 }
 0x4b7   : > { %v1476_v30 = vadd.f32 1e-05, %v1474_v5 }
 0x4b9   : > { %2708 = vrsqrt.f32 %v1476_v30  ;;  %vm1484_vm6 = vweird.f32 %v1476_v30 }
 0x4bc   : > { %v1469_v33 = vpop.f32.mrf.mxu1 }
 0x4bd   : > { %v1475_v56 = vsub.f32 %v1469_v33, %v1473_v51  ;;  %v3951_v51 = vpop.permute.xlu1 %1664 }
 0x4bf   : > { %v2709_v24 = vpop.eup %2708  ;;  %v1477_v59 = vadd.f32 1e-05, %v1475_v56 }
 0x4c0   : > { %v1479_v34 = vmul.f32 %v2709_v24, %v1476_v30  ;;  %vm1485_vm1 = vweird.f32 %v2709_v24 }
 0x4c1   : > { %2710 = vrsqrt.f32 %v1477_v59  ;;  %vm1486_vm7 = vmor %vm1484_vm6, %vm1485_vm1  ;;  %vm1494_vm3 = vweird.f32 %v1477_v59 }
 0x4c2   : > { %v1480_v52 = vmul.f32 %v2709_v24, %v1479_v34 }
 0x4c4   : > { %v1481_v63 = vmul.f32 0.5, %v1480_v52  ;;  %v1660_v52 = vpop.permute.xlu2 %1659 }
 0x4c6   : > { %v1482_v3 = vsub.f32 1.5, %v1481_v63 }
 0x4c7   : > { %v2711_v57 = vpop.eup %2710 }
 0x4c8   : > { %v1483_v9 = vmul.f32 %v2709_v24, %v1482_v3  ;;  %v1489_v39 = vmul.f32 %v2711_v57, %v1477_v59  ;;  %vm1495_vm8 = vweird.f32 %v2711_v57 }
 0x4c9   : > { %vm1496_vm4 = vmor %vm1494_vm3, %vm1495_vm8 }
 0x4ca   : > { %v1487_v28 = vsel %vm1486_vm7, %v2709_v24, %v1483_v9  ;;  %v1490_v43 = vmul.f32 %v2711_v57, %v1489_v39  ;;  %v1678_v39 = vpop.permute.xlu1 %1677 }
 0x4cb   : > { %v1498_v58 = vmul.f32 %v1487_v28, %v1460_v60 }
 0x4cc   : > { %v1491_v42 = vmul.f32 0.5, %v1490_v43 }
 0x4cd   : > { %2582 = vmatmul.msk.f32.vlgmr.msra.gmra.mxu2 %vm805_vm5, %v1498_v58  ;;  %2587 = vmatmul.msk.f32.vlgmr.msra.gmra.mxu3 %vm805_vm5, %v1498_v58 }
 0x4ce   : > { %v1492_v0 = vsub.f32 1.5, %v1491_v42  ;;  %2592 = vmatmul.msk.f32.vlgmr.msrb.gmra.mxu0 %vm805_vm5, %v1498_v58  ;;  %2597 = vmatmul.msk.f32.vlgmr.msrb.gmra.mxu1 %vm805_vm5, %v1498_v58 }
 0x4d0   : > { %v1493_v4 = vmul.f32 %v2711_v57, %v1492_v0 }
 0x4d2   : > { %v1497_v61 = vsel %vm1496_vm4, %v2711_v57, %v1493_v4 }
 0x4d3   : > { %v1499_v62 = vmul.f32 %v1497_v61, %v1463_v44 }
 0x4d5   : > { %2583 = vmatmul.msk.f32.gmra.mxu2 %vm805_vm5, %v1499_v62  ;;  %2588 = vmatmul.msk.f32.gmra.mxu3 %vm805_vm5, %v1499_v62 }
 0x4d6   : > { %2593 = vmatmul.msk.f32.gmra.mxu0 %vm805_vm5, %v1499_v62  ;;  %2598 = vmatmul.msk.f32.gmra.mxu1 %vm805_vm5, %v1499_v62 }
 0x4dd   : > { %2584 = vmatmul.msk.f32.gmra.mxu2 %vm805_vm5, %v1487_v28  ;;  %2589 = vmatmul.msk.f32.gmra.mxu3 %vm805_vm5, %v1487_v28 }
 0x4de   : > { %2594 = vmatmul.msk.f32.gmra.mxu0 %vm805_vm5, %v1487_v28  ;;  %2599 = vmatmul.msk.f32.gmra.mxu1 %vm805_vm5, %v1487_v28 }
 0x4e5   : > { %2585 = vmatmul.msk.f32.gmra.mxu2 %vm805_vm5, %v1497_v61  ;;  %2590 = vmatmul.msk.f32.gmra.mxu3 %vm805_vm5, %v1497_v61 }
 0x4e6   : > { %2595 = vmatmul.msk.f32.gmra.mxu0 %vm805_vm5, %v1497_v61  ;;  %2600 = vmatmul.msk.f32.gmra.mxu1 %vm805_vm5, %v1497_v61 }
 0x54b   : > { %v1600_v60 = vpop.f32.mrf.mxu0  ;;  %v1629_v44 = vpop.f32.mrf.mxu1 }
 0x550   : > { %v1542_v2 = vpop.f32.mrf.mxu2  ;;  %v1571_v1 = vpop.f32.mrf.mxu3 }
 0x553   : > { %v3949_v5 = vpop.f32.mrf.mxu0  ;;  %v1632_v30 = vpop.f32.mrf.mxu1 }
 0x558   : > { %v1545_v33 = vpop.f32.mrf.mxu2  ;;  %v1574_v56 = vpop.f32.mrf.mxu3 }
 0x55b   : > { %v1606_v45 = vpop.f32.mrf.mxu0  ;;  %v1635_v24 = vpop.f32.mrf.mxu1 }
 0x55c   : > { %v1643_v59 = vmul.f32 %v1606_v45, %v3873_v8  ;;  %v1644_v34 = vmul.f32 %v1635_v24, %v3879_v17 }
 0x55e   : > { %v1651_v63 = vsub.f32 %v1643_v59, %v1600_v60  ;;  %v1652_v3 = vsub.f32 %v1644_v34, %v1629_v44 }
 0x560   : > { %v1669_v35 = vmul.f32 %v1660_v52, %v1651_v63  ;;  %v1670_v16 = vmul.f32 %v1660_v52, %v1652_v3  ;;  %v1548_v57 = vpop.f32.mrf.mxu2  ;;  %v1577_v9 = vpop.f32.mrf.mxu3 }
 0x561   : > { %v1641_v28 = vmul.f32 %v1548_v57, %v3877_v31  ;;  %v1642_v43 = vmul.f32 %v1577_v9, %v3868_v47 }
 0x562   : > { %v3957_v58 = vadd.f32 %v1678_v39, %v1669_v35  ;;  %v3959_v42 = vadd.f32 %v1678_v39, %v1670_v16 }
 0x563   : > { %v1649_v0 = vsub.f32 %v1641_v28, %v1542_v2  ;;  %v1650_v8 = vsub.f32 %v1642_v43, %v1571_v1  ;;  %v1638_v60 = vpop.f32.mrf.mxu1  ;;  %v1609_v28 = vpop.f32.mrf.mxu0 }
 0x564   : > { %v2603_v17 = vmul.f32 -1.442695, %v3957_v58  ;;  %v2604_v4 = vmul.f32 -1.442695, %v3959_v42  ;;  %v1648_v47 = vmul.f32 %v1638_v60, %v3890_v10  ;;  %v3982_v43 = vpop.permute.xlu0 %1682 }
 0x565   : > { %v1667_v61 = vmul.f32 %v1660_v52, %v1649_v0  ;;  %v1668_v62 = vmul.f32 %v1660_v52, %v1650_v8 }
 0x566   : > { %2712 = vpow2.f32 %v2603_v17  ;;  %v1656_v35 = vsub.f32 %v1648_v47, %v1632_v30 }
 0x567   : > { %2714 = vpow2.f32 %v2604_v4  ;;  %v3963_v44 = vadd.f32 %v1678_v39, %v1667_v61  ;;  %v3965_v31 = vadd.f32 %v1678_v39, %v1668_v62 }
 0x568   : > { %v1551_v45 = vpop.f32.mrf.mxu2  ;;  %v1580_v24 = vpop.f32.mrf.mxu3 }
 0x569   : > { %v2601_v2 = vmul.f32 -1.442695, %v3963_v44  ;;  %v2602_v1 = vmul.f32 -1.442695, %v3965_v31  ;;  %v1645_v59 = vmul.f32 %v1551_v45, %v3888_v37  ;;  %v1646_v34 = vmul.f32 %v1580_v24, %v3871_v27 }
 0x56a   : > { %v1647_v27 = vmul.f32 %v1609_v28, %v3881_v54 }
 0x56b   : > { %2716 = vpow2.f32 %v2601_v2  ;;  %v1653_v52 = vsub.f32 %v1645_v59, %v1545_v33  ;;  %v1654_v63 = vsub.f32 %v1646_v34, %v1574_v56  ;;  %v1674_v33 = vmul.f32 %v3951_v51, %v1656_v35 }
 0x56c   : > { %v2713_v3 = vpop.eup %2712  ;;  %2718 = vpow2.f32 %v2602_v1  ;;  %v1655_v8 = vsub.f32 %v1647_v27, %v3949_v5 }
 0x56d   : > { %v2715_v16 = vpop.eup %2714  ;;  %v1719_v57 = vadd.f32 1.0, %v2713_v3  ;;  %v3973_v10 = vmul.f32 %v3951_v51, %v1653_v52  ;;  %v3976_v9 = vmul.f32 %v3951_v51, %v1654_v63  ;;  %v3987_v17 = vadd.f32 %v3982_v43, %v1674_v33 }
 0x56e   : > { %v1720_v39 = vadd.f32 1.0, %v2715_v16  ;;  %v1673_v45 = vmul.f32 %v3951_v51, %v1655_v8 }
 0x56f   : > { %2720 = vrcp.f32 %v1719_v57  ;;  %v2608_v24 = vmul.f32 -1.442695, %v3987_v17  ;;  %v1766_v27 = vand.u32 2147483648, %v1719_v57  ;;  %vm1760_vm3 = vweird.f32 %v1719_v57 }
 0x570   : > { %2722 = vrcp.f32 %v1720_v39  ;;  %v1779_v1 = vand.u32 2147483647, %v1720_v39  ;;  %v1781_v59 = vand.u32 2147483648, %v1720_v39  ;;  %vm1775_vm1 = vweird.f32 %v1720_v39 }
 0x571   : > { %v2717_v37 = vpop.eup %2716  ;;  %v3996_v3 = vadd.f32 %v3982_v43, %v1673_v45 }
 0x572   : > { %v3980_v56 = vadd.f32 1.0, %v2717_v37  ;;  %v2719_v30 = vpop.eup %2718  ;;  %vm1780_vm7 = vcmp.eq.f32.partialorder %v1779_v1, 8.507059e+37  ;;  %v1782_v51 = vor.u32 1.1754944e-38, %v1781_v59 }
 0x573   : > { %v3989_v62 = vadd.f32 1.0, %v2719_v30  ;;  %v1764_v30 = vand.u32 2147483647, %v1719_v57 }
 0x574   : > { %2724 = vrcp.f32 %v3980_v56  ;;  %v1734_v59 = vand.u32 2147483647, %v3980_v56 }
 0x575   : > { %v2721_v0 = vpop.eup %2720  ;;  %2726 = vrcp.f32 %v3989_v62 }
 0x576   : > { %v2723_v4 = vpop.eup %2722  ;;  %v1756_v61 = vmul.f32 %v2721_v0, %v1719_v57  ;;  %2728 = vpow2.f32 %v2608_v24  ;;  %vm1761_vm8 = vweird.f32 %v2721_v0  ;;  %v1736_v24 = vand.u32 2147483648, %v3980_v56 }
 0x577   : > { %v1771_v54 = vmul.f32 %v2723_v4, %v1720_v39  ;;  %vm1776_vm5 = vweird.f32 %v2723_v4  ;;  %v2607_v39 = vmul.f32 -1.442695, %v3996_v3  ;;  %vm1762_vm4 = vmor %vm1760_vm3, %vm1761_vm8  ;;  %vm1735_vm8 = vcmp.eq.f32.partialorder %v1734_v59, 8.507059e+37 }
 0x578   : > { %v1757_v60 = vsub.f32 1.0, %v1756_v61  ;;  %vm1777_vm6 = vmor %vm1775_vm1, %vm1776_vm5  ;;  %vm1765_vm5 = vcmp.eq.f32.partialorder %v1764_v30, 8.507059e+37 }
 0x579   : > { %v1772_v47 = vsub.f32 1.0, %v1771_v54  ;;  %2730 = vpow2.f32 %v2607_v39 }
 0x57a   : > { %v2725_v2 = vpop.eup %2724  ;;  %v1758_v5 = vmul.f32 %v2721_v0, %v1757_v60 }
 0x57b   : > { %v1773_v34 = vmul.f32 %v2723_v4, %v1772_v47  ;;  %v1726_v52 = vmul.f32 %v2725_v2, %v3980_v56  ;;  %v2727_v37 = vpop.eup %2726  ;;  %vm1731_vm1 = vweird.f32 %v2725_v2 }
 0x57c   : > { %v1759_v35 = vadd.f32 %v2721_v0, %v1758_v5  ;;  %v2729_v61 = vpop.eup %2728  ;;  %v1741_v47 = vmul.f32 %v2727_v37, %v3989_v62  ;;  %vm1746_vm3 = vweird.f32 %v2727_v37 }
 0x57d   : > { %v1774_v63 = vadd.f32 %v2723_v4, %v1773_v34  ;;  %v1727_v28 = vsub.f32 1.0, %v1726_v52  ;;  %v1724_v57 = vadd.f32 1.0, %v2729_v61 }
 0x57e   : > { %v1763_v54 = vsel %vm1762_vm4, %v2721_v0, %v1759_v35  ;;  %v1742_v0 = vsub.f32 1.0, %v1741_v47  ;;  %vm1745_vm4 = vweird.f32 %v3989_v62 }
 0x57f   : > { %v1778_v16 = vsel %vm1777_vm6, %v2723_v4, %v1774_v63  ;;  %v1728_v60 = vmul.f32 %v2725_v2, %v1727_v28  ;;  %v1767_v4 = vor.u32 1.1754944e-38, %v1766_v27  ;;  %vm1730_vm6 = vweird.f32 %v3980_v56  ;;  %v2731_v5 = vpop.eup %2730 }
 0x580   : > { %v1783_v33 = vsel %vm1780_vm7, %v1782_v51, %v1778_v16  ;;  %vm1732_vm7 = vmor %vm1730_vm6, %vm1731_vm1  ;;  %2732 = vrcp.f32 %v1724_v57  ;;  %v1743_v52 = vmul.f32 %v2727_v37, %v1742_v0  ;;  %v1737_v63 = vor.u32 1.1754944e-38, %v1736_v24 }
 0x581   : > { %v3999_v8 = vmul.f32 %v1783_v33, %v3959_v42  ;;  %v1768_v42 = vsel %vm1765_vm5, %v1767_v4, %v1763_v54  ;;  %v1729_v45 = vadd.f32 %v2725_v2, %v1728_v60  ;;  %v1723_v51 = vadd.f32 1.0, %v2731_v5  ;;  %vm1747_vm5 = vmor %vm1745_vm4, %vm1746_vm3 }
 0x582   : > { %v4011_v1 = vmul.f32 %v1768_v42, %v3957_v58  ;;  %v1744_v35 = vadd.f32 %v2727_v37, %v1743_v52  ;;  %v1751_v16 = vand.u32 2147483648, %v3989_v62  ;;  %v1749_v28 = vand.u32 2147483647, %v3989_v62 }
 0x583   : > { %4749 = vst [vmem:[#allocation25_spill] sm:$0xff] %v3999_v8  ;;  %1903 = vrot.lane.b32.xlu1 %v3999_v8, %s4750_s23  ;;  %1935 = vrot.lane.b32.xlu0 %v3999_v8, %s4751_s24  ;;  %v1733_v34 = vsel %vm1732_vm7, %v2725_v2, %v1729_v45  ;;  %2734 = vrcp.f32 %v1723_v51  ;;  %v4044_v60 = vadd.f32 %v3982_v43, %v3973_v10  ;;  %vm1835_vm7 = vweird.f32 %v1724_v57 }
 0x584   : > { %1967 = vrot.lane.b32.xlu2 %v3999_v8, %s4752_s30  ;;  %v1738_v58 = vsel %vm1735_vm8, %v1737_v63, %v1733_v34  ;;  %v1748_v27 = vsel %vm1747_vm5, %v2727_v37, %v1744_v35  ;;  %v1752_v30 = vor.u32 1.1754944e-38, %v1751_v16  ;;  %vm1750_vm1 = vcmp.eq.f32.partialorder %v1749_v28, 8.507059e+37 }
 0x585   : > { %v4023_v2 = vmul.f32 %v1738_v58, %v3963_v44  ;;  %v1839_v42 = vand.u32 2147483647, %v1724_v57  ;;  %v2605_v45 = vmul.f32 -1.442695, %v4044_v60  ;;  %v4055_v10 = vadd.f32 %v3982_v43, %v3976_v9 }
 0x586   : > { %v2733_v56 = vpop.eup %2732  ;;  %v1753_v44 = vsel %vm1750_vm1, %v1752_v30, %v1748_v27  ;;  %v1826_v34 = vand.u32 2147483648, %v1723_v51  ;;  %vm1820_vm5 = vweird.f32 %v1723_v51  ;;  %v1824_v52 = vand.u32 2147483647, %v1723_v51 }
 0x587   : > { %v1831_v33 = vmul.f32 %v2733_v56, %v1724_v57  ;;  %v4034_v62 = vmul.f32 %v1753_v44, %v3965_v31  ;;  %vm1836_vm6 = vweird.f32 %v2733_v56  ;;  %v1841_v31 = vand.u32 2147483648, %v1724_v57 }
 0x588   : > { %vm1837_vm8 = vmor %vm1835_vm7, %vm1836_vm6  ;;  %vm1840_vm3 = vcmp.eq.f32.partialorder %v1839_v42, 8.507059e+37  ;;  %2736 = vpow2.f32 %v2605_v45  ;;  %v2606_v58 = vmul.f32 -1.442695, %v4055_v10  ;;  %v1827_v43 = vor.u32 1.1754944e-38, %v1826_v34 }
 0x589   : > { %v1832_v39 = vsub.f32 1.0, %v1831_v33  ;;  %v2735_v61 = vpop.eup %2734  ;;  %v1842_v59 = vor.u32 1.1754944e-38, %v1841_v31  ;;  %vm1825_vm6 = vcmp.eq.f32.partialorder %v1824_v52, 8.507059e+37 }
 0x58a   : > { %v1816_v54 = vmul.f32 %v2735_v61, %v1723_v51  ;;  %vm1821_vm4 = vweird.f32 %v2735_v61  ;;  %2738 = vpow2.f32 %v2606_v58 }
 0x58b   : > { %1871 = vrot.lane.b32.xlu1 %v3999_v8, %s4753_s29  ;;  %2027 = vrot.lane.b32.xlu0 %v4011_v1, %s4754_s26  ;;  %v1833_v37 = vmul.f32 %v2733_v56, %v1832_v39  ;;  %vm1822_vm1 = vmor %vm1820_vm5, %vm1821_vm4 }
 0x58c   : > { %2059 = vrot.lane.b32.xlu2 %v4011_v1, %s4755_s19  ;;  %v1817_v47 = vsub.f32 1.0, %v1816_v54 }
 0x58d   : > { %v1834_v4 = vadd.f32 %v2733_v56, %v1833_v37 }
 0x58e   : > { %v1818_v0 = vmul.f32 %v2735_v61, %v1817_v47  ;;  %v2737_v9 = vpop.eup %2736 }
 0x58f   : > { %v1838_v24 = vsel %vm1837_vm8, %v2733_v56, %v1834_v4 }
 0x590   : > { %v1843_v57 = vsel %vm1840_vm3, %v1842_v59, %v1838_v24  ;;  %v1819_v5 = vadd.f32 %v2735_v61, %v1818_v0  ;;  %v2739_v16 = vpop.eup %2738 }
 0x591   : > { %v4058_v63 = vmul.f32 %v1843_v57, %v3987_v17  ;;  %v1721_v17 = vadd.f32 1.0, %v2737_v9  ;;  %v1722_v28 = vadd.f32 1.0, %v2739_v16 }
 0x592   : > { %v1823_v35 = vsel %vm1822_vm1, %v2735_v61, %v1819_v5 }
 0x593   : > { %2031 = vrot.lane.b32.xlu0 %v3999_v8, %s4754_s26  ;;  %2051 = vrot.lane.b32.xlu1 %v4023_v2, %s4755_s19  ;;  %4757 = vst [vmem:[#allocation26_spill] sm:$0xff] %v4058_v63  ;;  %v1828_v51 = vsel %vm1825_vm6, %v1827_v43, %v1823_v35  ;;  %2740 = vrcp.f32 %v1721_v17  ;;  %v1796_v37 = vand.u32 2147483648, %v1721_v17  ;;  %vm1790_vm8 = vweird.f32 %v1721_v17 }
 0x594   : > { %2063 = vrot.lane.b32.xlu2 %v3999_v8, %s4755_s19  ;;  %v4068_v56 = vmul.f32 %v1828_v51, %v3996_v3  ;;  %2742 = vrcp.f32 %v1722_v28  ;;  %v1794_v47 = vand.u32 2147483647, %v1721_v17  ;;  %v1811_v24 = vand.u32 2147483648, %v1722_v28 }
 0x595   : > { %v1797_v42 = vor.u32 1.1754944e-38, %v1796_v37  ;;  %vm1805_vm1 = vweird.f32 %v1722_v28  ;;  %v1809_v59 = vand.u32 2147483647, %v1722_v28 }
 0x596   : > { %vm1795_vm4 = vcmp.eq.f32.partialorder %v1794_v47, 8.507059e+37  ;;  %v1812_v34 = vor.u32 1.1754944e-38, %v1811_v24 }
 0x599   : > { %v2741_v27 = vpop.eup %2740 }
 0x59a   : > { %v1786_v3 = vmul.f32 %v2741_v27, %v1721_v17  ;;  %v2743_v33 = vpop.eup %2742  ;;  %vm1791_vm7 = vweird.f32 %v2741_v27 }
 0x59b   : > { %2023 = vrot.lane.b32.xlu0 %v4034_v62, %s4754_s26  ;;  %1991 = vrot.lane.b32.xlu1 %v4034_v62, %s4756_s20  ;;  %v1801_v44 = vmul.f32 %v2743_v33, %v1722_v28  ;;  %vm1792_vm3 = vmor %vm1790_vm8, %vm1791_vm7  ;;  %vm1806_vm5 = vweird.f32 %v2743_v33  ;;  %vm1810_vm7 = vcmp.eq.f32.partialorder %v1809_v59, 8.507059e+37 }
 0x59c   : > { %2055 = vrot.lane.b32.xlu2 %v4034_v62, %s4755_s19  ;;  %v1787_v30 = vsub.f32 1.0, %v1786_v3  ;;  %vm1807_vm6 = vmor %vm1805_vm1, %vm1806_vm5 }
 0x59d   : > { %v1802_v61 = vsub.f32 1.0, %v1801_v44 }
 0x59e   : > { %v1788_v39 = vmul.f32 %v2741_v27, %v1787_v30 }
 0x59f   : > { %v1803_v4 = vmul.f32 %v2743_v33, %v1802_v61 }
 0x5a0   : > { %v1789_v54 = vadd.f32 %v2741_v27, %v1788_v39 }
 0x5a1   : > { %v1804_v0 = vadd.f32 %v2743_v33, %v1803_v4 }
 0x5a2   : > { %v1793_v31 = vsel %vm1792_vm3, %v2741_v27, %v1789_v54 }
 0x5a3   : > { %1987 = vrot.lane.b32.xlu0 %v4023_v2, %s4756_s20  ;;  %1955 = vrot.lane.b32.xlu1 %v4023_v2, %s4752_s30  ;;  %v1798_v45 = vsel %vm1795_vm4, %v1797_v42, %v1793_v31  ;;  %v1808_v5 = vsel %vm1807_vm6, %v2743_v33, %v1804_v0 }
 0x5a4   : > { %2019 = vrot.lane.b32.xlu2 %v4023_v2, %s4754_s26  ;;  %v4095_v57 = vmul.f32 %v1798_v45, %v4044_v60  ;;  %v1813_v52 = vsel %vm1810_vm7, %v1812_v34, %v1808_v5 }
 0x5a5   : > { %v4104_v58 = vmul.f32 %v1813_v52, %v4055_v10 }
 0x5ab   : > { %1891 = vrot.lane.b32.xlu0 %v4023_v2, %s4750_s23  ;;  %1937 = vrot.lane.b32.xlu1 %v4058_v63, %s4751_s24 }
 0x5ac   : > { %1923 = vrot.lane.b32.xlu2 %v4023_v2, %s4751_s24 }
 0x5b3   : > { %1859 = vrot.lane.b32.xlu0 %v4023_v2, %s4753_s29  ;;  %2061 = vrot.lane.b32.xlu1 %v4068_v56, %s4755_s19 }
 0x5b4   : > { %2083 = vrot.lane.b32.xlu2 %v4023_v2, %s4758_s1 }
 0x5bb   : > { %2087 = vrot.lane.b32.xlu0 %v4034_v62, %s4758_s1  ;;  %2029 = vrot.lane.b32.xlu1 %v4068_v56, %s4754_s26 }
 0x5bc   : > { %1905 = vrot.lane.b32.xlu2 %v4058_v63, %s4750_s23 }
 0x5c3   : > { %1969 = vrot.lane.b32.xlu0 %v4058_v63, %s4752_s30  ;;  %2033 = vrot.lane.b32.xlu1 %v4058_v63, %s4754_s26 }
 0x5c4   : > { %1997 = vrot.lane.b32.xlu2 %v4068_v56, %s4756_s20 }
 0x5cb   : > { %1873 = vrot.lane.b32.xlu0 %v4058_v63, %s4753_s29  ;;  %2093 = vrot.lane.b32.xlu1 %v4068_v56, %s4758_s1 }
 0x5cc   : > { %2097 = vrot.lane.b32.xlu2 %v4058_v63, %s4758_s1 }
 0x5d3   : > { %2065 = vrot.lane.b32.xlu0 %v4058_v63, %s4755_s19  ;;  %2001 = vrot.lane.b32.xlu1 %v4058_v63, %s4756_s20 }
 0x5d4   : > { %2053 = vrot.lane.b32.xlu2 %v4095_v57, %s4755_s19 }
 0x5db   : > { %2057 = vrot.lane.b32.xlu0 %v4104_v58, %s4755_s19  ;;  %2025 = vrot.lane.b32.xlu1 %v4104_v58, %s4754_s26 }
 0x5dc   : > { %2091 = vrot.lane.b32.xlu2 %v4011_v1, %s4758_s1 }
 0x5de   : > { %v4112_v60 = vpop.permute.xlu2 %1967 }
 0x5e3   : > { %1989 = vrot.lane.b32.xlu1 %v4095_v57, %s4756_s20  ;;  %2021 = vrot.lane.b32.xlu0 %v4095_v57, %s4754_s26 }
 0x5e4   : > { %1993 = vrot.lane.b32.xlu2 %v4104_v58, %s4756_s20 }
 0x5e6   : > { %v2060_v10 = vpop.permute.xlu2 %2059 }
 0x5eb   : > { %1999 = vrot.lane.b32.xlu1 %v3999_v8, %s4756_s20  ;;  %1995 = vrot.lane.b32.xlu0 %v4011_v1, %s4756_s20 }
 0x5ec   : > { %1957 = vrot.lane.b32.xlu2 %v4095_v57, %s4752_s30 }
 0x5ee   : > { %v2064_v35 = vpop.permute.xlu2 %2063 }
 0x5ef   : > { %v4128_v9 = vsel %vm1165_vm10, %v2060_v10, %v2064_v35 }
 0x5f0   : > { %v2077_v32 = vmul.f32 %v4128_v9, %v3515_v40 }
 0x5f3   : > { %1893 = vrot.lane.b32.xlu1 %v4095_v57, %s4750_s23  ;;  %1925 = vrot.lane.b32.xlu0 %v4095_v57, %s4751_s24 }
 0x5f4   : > { %1861 = vrot.lane.b32.xlu2 %v4095_v57, %s4753_s29 }
 0x5f5   : > { %v4136_v43 = vpop.permute.xlu1 %1903  ;;  %v4138_v51 = vpop.permute.xlu0 %1935 }
 0x5f6   : > { %v2056_v17 = vpop.permute.xlu2 %2055 }
 0x5f7   : > { %v4142_v16 = vsel %vm1165_vm10, %v2056_v17, %v2060_v10 }
 0x5fb   : > { %2085 = vrot.lane.b32.xlu1 %v4095_v57, %s4758_s1  ;;  %2095 = vrot.lane.b32.xlu0 %v3999_v8, %s4758_s1 }
 0x5fc   : > { %1933 = vrot.lane.b32.xlu2 %v4068_v56, %s4751_s24 }
 0x5fd   : > { %v4150_v28 = vpop.permute.xlu1 %1871  ;;  %v2028_v27 = vpop.permute.xlu0 %2027 }
 0x5fe   : > { %v2020_v3 = vpop.permute.xlu2 %2019 }
 0x603   : > { %1965 = vrot.lane.b32.xlu1 %v4068_v56, %s4752_s30  ;;  %1959 = vrot.lane.b32.xlu0 %v4034_v62, %s4752_s30 }
 0x604   : > { %2089 = vrot.lane.b32.xlu2 %v4104_v58, %s4758_s1 }
 0x605   : > { %v2032_v33 = vpop.permute.xlu0 %2031  ;;  %v2052_v30 = vpop.permute.xlu1 %2051 }
 0x606   : > { %v2035_v44 = vsel %vm1144_vm11, %v2028_v27, %v2032_v33  ;;  %v4162_v39 = vsel %vm1144_vm11, %v2032_v33, %v2020_v3  ;;  %v4164_v61 = vpop.permute.xlu2 %1923  ;;  %v4168_v54 = vsel %vm1165_vm10, %v2052_v30, %v2056_v17  ;;  %v4172_v37 = vsel %vm1165_vm10, %v2064_v35, %v2052_v30 }
 0x607   : > { %4759 = vst [vmem:[#allocation27_spill] sm:$0xff] %v4162_v39  ;;  %v2045_v50 = vmul.f32 %v2035_v44, %v3521_v38 }
 0x608   : > { %4760 = vst [vmem:[#allocation28_spill] sm:$0xff] %v4172_v37 }
 0x60b   : > { %1927 = vrot.lane.b32.xlu1 %v4034_v62, %s4751_s24  ;;  %1963 = vrot.lane.b32.xlu0 %v4011_v1, %s4752_s30 }
 0x60c   : > { %1895 = vrot.lane.b32.xlu2 %v4034_v62, %s4750_s23 }
 0x60d   : > { %v2024_v47 = vpop.permute.xlu0 %2023  ;;  %v4180_v4 = vpop.permute.xlu1 %1991 }
 0x60e   : > { %v4184_v31 = vsel %vm1144_vm11, %v2024_v47, %v2028_v27  ;;  %v4188_v42 = vsel %vm1144_vm11, %v2020_v3, %v2024_v47  ;;  %v4190_v45 = vpop.permute.xlu2 %2083  ;;  %v1858_v27 = vld [vmem:[%s4663_s13 + $0x8] sm:$0xff]  ;;  %v1857_v3 = vld [vmem:[%s4663_s13] sm:$0xff] }
 0x613   : > { %1931 = vrot.lane.b32.xlu1 %v4011_v1, %s4751_s24  ;;  %1901 = vrot.lane.b32.xlu0 %v4068_v56, %s4750_s23 }
 0x614   : > { %1961 = vrot.lane.b32.xlu2 %v4104_v58, %s4752_s30 }
 0x615   : > { %v4198_v0 = vpop.permute.xlu0 %1987  ;;  %v4200_v24 = vpop.permute.xlu1 %1955 }
 0x616   : > { %v4202_v59 = vpop.permute.xlu2 %1905 }
 0x61b   : > { %1865 = vrot.lane.b32.xlu1 %v4104_v58, %s4753_s29  ;;  %1897 = vrot.lane.b32.xlu0 %v4104_v58, %s4750_s23 }
 0x61c   : > { %1929 = vrot.lane.b32.xlu2 %v4104_v58, %s4751_s24 }
 0x61d   : > { %v4210_v5 = vpop.permute.xlu0 %1891  ;;  %v4212_v34 = vpop.permute.xlu1 %1937 }
 0x61e   : > { %v1998_v52 = vpop.permute.xlu2 %1997 }
 0x623   : > { %1869 = vrot.lane.b32.xlu1 %v4068_v56, %s4753_s29  ;;  %1863 = vrot.lane.b32.xlu0 %v4034_v62, %s4753_s29 }
 0x624   : > { %1899 = vrot.lane.b32.xlu2 %v4011_v1, %s4750_s23  ;;  %s2812_s23 = scalar_lea.hbm %s4666_s16, 128 }
 0x625   : > { %v4220_v10 = vpop.permute.xlu0 %1859  ;;  %v2062_v35 = vpop.permute.xlu1 %2061 }
 0x626   : > { %v4222_v17 = vpop.permute.xlu2 %2097 }
 0x62b   : > { %2122 = vperm.xlu1 %2684, %v1858_v27   ;;  %2117 = vperm.xlu0 %2683, %v1857_v3  }
 0x62c   : > { %1867 = vrot.lane.b32.xlu2 %v4011_v1, %s4753_s29 }
 0x62d   : > { %v4232_v33 = vpop.permute.xlu0 %2087  ;;  %v2030_v30 = vpop.permute.xlu1 %2029 }
 0x62e   : > { %v2054_v47 = vpop.permute.xlu2 %2053 }
 0x633   : > { %2326 = vperm.xlu0 %2683, %v2318_v20  }
 0x634   : > { %2321 = vperm.xlu2 %2685, %v2317_v13  }
 0x635   : > { %v4240_v48 = vpop.permute.xlu0 %1969  ;;  %v2034_v27 = vpop.permute.xlu1 %2033 }
 0x636   : > { %v4242_v3 = vpop.permute.xlu2 %2091  ;;  %v2036_v22 = vsel %vm1144_vm11, %v2030_v30, %v2034_v27 }
 0x637   : > { %v2049_v6 = vmul.f32 %v2036_v22, %v3521_v38 }
 0x63d   : > { %v4244_v8 = vpop.permute.xlu0 %1873  ;;  %v4246_v15 = vpop.permute.xlu1 %2093 }
 0x63e   : > { %v1994_v63 = vpop.permute.xlu2 %1993 }
 0x645   : > { %v2066_v26 = vpop.permute.xlu0 %2065  ;;  %v2002_v39 = vpop.permute.xlu1 %2001 }
 0x646   : > { %v2068_v19 = vsel %vm1165_vm10, %v2062_v35, %v2066_v26  ;;  %v4252_v37 = vsel %vm1165_vm10, %v2066_v26, %v2054_v47  ;;  %v4254_v13 = vpop.permute.xlu2 %1957  ;;  %v2004_v26 = vsel %vm1123_vm12, %v1998_v52, %v2002_v39 }
 0x647   : > { %4761 = vst [vmem:[#allocation29_spill] sm:$0xff] %v4252_v37  ;;  %v2081_v20 = vmul.f32 %v2068_v19, %v3515_v40  ;;  %v4762_v40 = vld [vmem:[#allocation11_spill] sm:$0xff]  ;;  %v2017_v38 = vmul.f32 %v2004_v26, %v3539_v55 }
 0x648   : > { %v2075_v44 = vmul.f32 %v4168_v54, %v4762_v40 }
 0x649   : > { %2223 = vmatpush.msra.mxu1 %v2081_v20 }
 0x64b   : > { %2224 = vmatpush.msra.mxu1 %v2077_v32 }
 0x64d   : > { %v2058_v37 = vpop.permute.xlu0 %2057  ;;  %2225 = vmatpush.msra.mxu1 %v2049_v6  ;;  %v2026_v7 = vpop.permute.xlu1 %2025  ;;  %v2076_v6 = vmul.f32 %v4142_v16, %v3510_v25 }
 0x64e   : > { %v2070_v19 = vsel %vm1165_vm10, %v2058_v37, %v2062_v35  ;;  %v2072_v11 = vsel %vm1165_vm10, %v2054_v47, %v2058_v37  ;;  %v4269_v14 = vpop.permute.xlu2 %1861  ;;  %v2038_v22 = vsel %vm1144_vm11, %v2026_v7, %v2030_v30 }
 0x64f   : > { %v2079_v9 = vmul.f32 %v2072_v11, %v4762_v40  ;;  %v2080_v32 = vmul.f32 %v2070_v19, %v3510_v25  ;;  %2226 = vmatpush.msra.mxu1 %v2045_v50  ;;  %v2048_v37 = vmul.f32 %v2038_v22, %v3550_v21  ;;  %v2006_v11 = vsel %vm1123_vm12, %v1994_v63, %v1998_v52 }
 0x650   : > { %v2044_v50 = vmul.f32 %v4184_v31, %v3550_v21  ;;  %v2016_v52 = vmul.f32 %v2006_v11, %v3570_v41 }
 0x651   : > { %2131 = vmatpush.msrb.mxu2 %v2079_v9  ;;  %2177 = vmatpush.msra.mxu0 %v2080_v32  ;;  %v1977_v32 = vsel %vm1102_vm14, %v4112_v60, %v4200_v24 }
 0x652   : > { %2227 = vmatpush.msra.mxu1 %v2017_v38  ;;  %v1945_v38 = vsel %vm1081_vm13, %v4138_v51, %v4164_v61 }
 0x653   : > { %2132 = vmatpush.msrb.mxu2 %v2075_v44  ;;  %2178 = vmatpush.msra.mxu0 %v2076_v6  ;;  %v1882_v6 = vsel %vm1039_vm2, %v4244_v8, %v4269_v14 }
 0x655   : > { %2179 = vmatpush.msra.mxu0 %v2048_v37  ;;  %v1990_v35 = vpop.permute.xlu1 %1989  ;;  %v2022_v30 = vpop.permute.xlu0 %2021 }
 0x656   : > { %v4287_v25 = vsel %vm1123_vm12, %v2002_v39, %v1990_v35  ;;  %v2040_v16 = vsel %vm1144_vm11, %v2022_v30, %v2026_v7  ;;  %v4293_v54 = vsel %vm1144_vm11, %v2034_v27, %v2022_v30  ;;  %v4295_v47 = vpop.permute.xlu2 %1933  ;;  %v2008_v31 = vsel %vm1123_vm12, %v1990_v35, %v1994_v63 }
 0x657   : > { %v2047_v21 = vmul.f32 %v2040_v16, %v3547_v46  ;;  %2180 = vmatpush.msra.mxu0 %v2044_v50  ;;  %v2043_v39 = vmul.f32 %v4188_v42, %v3547_v46  ;;  %v2007_v7 = vsel %vm1123_vm12, %v4198_v0, %v4180_v4  ;;  %v2015_v27 = vmul.f32 %v2008_v31, %v3573_v49 }
 0x658   : > { %v2011_v20 = vmul.f32 %v2007_v7, %v3573_v49  ;;  %v1978_v49 = vsel %vm1102_vm14, %v4240_v48, %v4254_v13  ;;  %v2103_v30 = vsel %vm1186_vm9, %v4190_v45, %v4232_v33  ;;  %v1887_v16 = vmul.f32 %v1882_v6, %v3708_v29  ;;  %v4764_v6 = vld [vmem:[#allocation15_spill] sm:$0xff] }
 0x659   : > { %2133 = vmatpush.msrb.mxu2 %v2047_v21  ;;  %2181 = vmatpush.msra.mxu0 %v2016_v52  ;;  %v2100_v7 = vsel %vm1186_vm9, %v4246_v15, %v4222_v17 }
 0x65b   : > { %2134 = vmatpush.msrb.mxu2 %v2043_v39 }
 0x65d   : > { %v4309_v26 = vpop.permute.xlu1 %1999  ;;  %v1996_v19 = vpop.permute.xlu0 %1995  ;;  %2135 = vmatpush.msrb.mxu2 %v2015_v27 }
 0x65e   : > { %v2003_v46 = vsel %vm1123_vm12, %v1996_v19, %v4309_v26  ;;  %v2005_v63 = vsel %vm1123_vm12, %v4180_v4, %v1996_v19  ;;  %v2090_v42 = vpop.permute.xlu2 %2089  ;;  %v1983_v4 = vmul.f32 %v1978_v49, %v3632_v12 }
 0x65f   : > { %v2012_v40 = vmul.f32 %v2005_v63, %v3570_v41  ;;  %v2013_v9 = vmul.f32 %v2003_v46, %v3539_v55  ;;  %2136 = vmatpush.msrb.mxu2 %v2011_v20  ;;  %v1979_v55 = vmul.f32 %v1977_v32, %v3632_v12  ;;  %v2102_v21 = vsel %vm1186_vm9, %v2090_v42, %v4246_v15  ;;  %v4394_v20 = vld [vmem:[%s4662_s12] sm:$0xff]  ;;  %v2785_v15 = vld [vmem:[%s4733_s2 + $0x28] ss:$0 sm:$0xff]  ;;  %v2787_v32 = vld [vmem:[%s4733_s2 + $0x38] ss:$0 sm:$0xff] }
 0x660   : > { %v2112_v46 = vmul.f32 %v2785_v15, %v2102_v21 }
 0x661   : > { %2137 = vmatpush.msrb.mxu2 %v4095_v57  ;;  %2182 = vmatpush.msra.mxu0 %v2012_v40 }
 0x662   : > { %2228 = vmatpush.msra.mxu1 %v2013_v9 }
 0x663   : > { %2138 = vmatpush.msrb.mxu2 %v4023_v2  ;;  %2183 = vmatpush.msra.mxu0 %v4104_v58  ;;  %v1947_v58 = vmul.f32 %v1945_v38, %v3677_v18 }
 0x664   : > { %2229 = vmatpush.msra.mxu1 %v4068_v56 }
 0x665   : > { %v4333_v41 = vpop.permute.xlu1 %1893  ;;  %v4335_v57 = vpop.permute.xlu0 %1925  ;;  %2139 = vmatpush.msrb.mxu2 %v1983_v4  ;;  %2184 = vmatpush.msra.mxu0 %v4034_v62 }
 0x666   : > { %2230 = vmatpush.msra.mxu1 %v4011_v1  ;;  %v1946_v2 = vsel %vm1081_vm13, %v4212_v34, %v4335_v57  ;;  %v4347_v12 = vpop.permute.xlu2 %1895  ;;  %v1914_v62 = vsel %vm1060_vm15, %v4202_v59, %v4333_v41  ;;  %v1913_v1 = vsel %vm1060_vm15, %v4136_v43, %v4210_v5 }
 0x667   : > { %v1951_v56 = vmul.f32 %v1946_v2, %v3677_v18  ;;  %2140 = vmatpush.msrb.mxu2 %v1979_v55  ;;  %v1919_v22 = vmul.f32 %v1914_v62, %v3687_v23  ;;  %v1915_v44 = vmul.f32 %v1913_v1, %v3687_v23  ;;  %v1881_v18 = vsel %vm1039_vm2, %v4150_v28, %v4220_v10  ;;  %v2784_v23 = vld [vmem:[%s4733_s2 + $0x20] ss:$0 sm:$0xff] }
 0x668   : > { %v1883_v39 = vmul.f32 %v1881_v18, %v3708_v29  ;;  %v2107_v19 = vmul.f32 %v2784_v23, %v2103_v30  ;;  %v2101_v29 = vsel %vm1186_vm9, %v4232_v33, %v4242_v3  ;;  %v2786_v33 = vld [vmem:[%s4733_s2 + $0x30] ss:$0 sm:$0xff] }
 0x669   : > { %2141 = vmatpush.msrb.mxu2 %v1951_v56  ;;  %v2113_v40 = vmul.f32 %v2786_v33, %v2100_v7  ;;  %v2108_v9 = vmul.f32 %v2785_v15, %v2101_v29  ;;  %v4763_v56 = vld [vmem:[#allocation14_spill] sm:$0xff]  ;;  %v2790_v7 = vld [vmem:[%s3249_s18 + $0x18] sm:$0xff] }
 0x66b   : > { %2142 = vmatpush.msrb.mxu2 %v1947_v58 }
 0x66d   : > { %v2086_v37 = vpop.permute.xlu1 %2085  ;;  %v2096_v11 = vpop.permute.xlu0 %2095  ;;  %2143 = vmatpush.msrb.mxu2 %v1919_v22 }
 0x66e   : > { %v2104_v50 = vsel %vm1186_vm9, %v2086_v37, %v2090_v42  ;;  %v1962_v35 = vpop.permute.xlu2 %1961  ;;  %v2106_v63 = vsel %vm1186_vm9, %v4222_v17, %v2086_v37  ;;  %v2099_v42 = vsel %vm1186_vm9, %v4242_v3, %v2096_v11  ;;  %v2105_v49 = vsel %vm1186_vm9, %v2096_v11, %v4190_v45  ;;  %v2788_v37 = vld [vmem:[%s3249_s18] sm:$0xff] }
 0x66f   : > { %v2111_v52 = vmul.f32 %v2784_v23, %v2104_v50  ;;  %2144 = vmatpush.msrb.mxu2 %v1915_v44  ;;  %v1976_v31 = vsel %vm1102_vm14, %v4254_v13, %v1962_v35  ;;  %v4403_v13 = vld [vmem:[%s4662_s12 + $0x8] sm:$0xff]  ;;  %v2114_v4 = vmul.f32 %v2787_v32, %v2106_v63  ;;  %v2109_v55 = vmul.f32 %v2786_v33, %v2099_v42  ;;  %v4765_v23 = vld [vmem:[#allocation17_spill] sm:$0xff] }
 0x670   : > { %v1984_v27 = vmul.f32 %v1976_v31, %v3589_v53  ;;  %v2110_v1 = vmul.f32 %v2787_v32, %v2105_v49  ;;  %v2789_v31 = vld [vmem:[%s3249_s18 + $0x10] sm:$0xff]  ;;  %v4767_v49 = vld [vmem:[#allocation18_spill] sm:$0xff]  ;;  %vm2329_vm9 = vcmask 64512  }
 0x671   : > { %2145 = vmatpush.msrb.mxu2 %v1887_v16  ;;  %2168 = vmatpush.msrb.mxu3 %v2111_v52 }
 0x672   : > { %2185 = vmatpush.msra.mxu0 %v1984_v27 }
 0x673   : > { %2146 = vmatpush.msrb.mxu2 %v1883_v39  ;;  %2169 = vmatpush.msrb.mxu3 %v2107_v19 }
 0x674   : > { %2147 = vmatmul.f32.vlgmr.msrb.gmra.mxu2 %v4394_v20  ;;  %2609 = vmatmul.msk.f32.vlgmr.msrb.gmra.mxu3 %vm755_vm0, %v4403_v13 }
 0x675   : > { %2214 = vmatpush.msra.mxu2 %v2112_v46  ;;  %v4423_v17 = vpop.permute.xlu1 %1965  ;;  %v1960_v3 = vpop.permute.xlu0 %1959  ;;  %2260 = vmatpush.msra.mxu3 %v2113_v40  ;;  %v1911_v46 = vsel %vm1060_vm15, %v4210_v5, %v4347_v12  ;;  %v4766_v40 = vld [vmem:[#allocation16_spill] sm:$0xff] }
 0x676   : > { %v1974_v38 = vsel %vm1102_vm14, %v1962_v35, %v4423_v17  ;;  %v1975_v45 = vsel %vm1102_vm14, %v4200_v24, %v1960_v3  ;;  %v1930_v2 = vpop.permute.xlu2 %1929  ;;  %v4443_v24 = vld [vmem:[%s4662_s12 + $0x10] sm:$0xff]  ;;  %v1916_v32 = vmul.f32 %v1911_v46, %v4766_v40 }
 0x677   : > { %v1985_v62 = vmul.f32 %v1974_v38, %v4763_v56  ;;  %v1980_v58 = vmul.f32 %v1975_v45, %v3589_v53  ;;  %2215 = vmatpush.msra.mxu2 %v2108_v9  ;;  %v1944_v22 = vsel %vm1081_vm13, %v4335_v57, %v1930_v2  ;;  %2261 = vmatpush.msra.mxu3 %v2109_v55  ;;  %v4448_v53 = vld [vmem:[%s4662_s12 + $0x18] sm:$0xff] }
 0x678   : > { %v1952_v44 = vmul.f32 %v1944_v22, %v4764_v6  ;;  %v1942_v18 = vsel %vm1081_vm13, %v1930_v2, %v4295_v47  ;;  %v4770_v22 = vld [vmem:[#allocation10_spill] sm:$0xff] }
 0x679   : > { %2306 = vmatpush.msrb.mxu2 %v2114_v4  ;;  %2186 = vmatpush.msra.mxu0 %v1980_v58  ;;  %v1953_v52 = vmul.f32 %v1942_v18, %v4765_v23  ;;  %v2315_v4 = vld [vmem:[%s4664_s14] sm:$0xff] }
 0x67a   : > { %2231 = vmatpush.msra.mxu1 %v1985_v62  ;;  %2351 = vmatpush.msrb.mxu3 %v2788_v37  ;;  %v4769_v58 = vld [vmem:[#allocation21_spill] sm:$0xff] }
 0x67b   : > { %2307 = vmatpush.msrb.mxu2 %v2110_v1  ;;  %2187 = vmatpush.msra.mxu0 %v1952_v44 }
 0x67c   : > { %2150 = vmatmul.f32.gmra.mxu2 %v4443_v24  ;;  %2610 = vmatmul.msk.f32.gmra.mxu3 %vm755_vm0, %v4448_v53 }
 0x67d   : > { %v1928_v57 = vpop.permute.xlu1 %1927  ;;  %v4454_v11 = vpop.permute.xlu0 %1963 }
 0x67e   : > { %v1943_v50 = vsel %vm1081_vm13, %v4164_v61, %v1928_v57  ;;  %v1973_v35 = vsel %vm1102_vm14, %v1960_v3, %v4454_v11  ;;  %v4482_v19 = vpop.permute.xlu2 %1899 }
 0x67f   : > { %v1948_v30 = vmul.f32 %v1943_v50, %v4764_v6  ;;  %v1981_v16 = vmul.f32 %v1973_v35, %v4763_v56  ;;  %v1909_v63 = vsel %vm1060_vm15, %v4347_v12, %v4482_v19  ;;  %v4771_v6 = vld [vmem:[#allocation29_spill] sm:$0xff]  ;;  %v4773_v50 = vld [vmem:[#allocation12_spill] sm:$0xff] }
 0x680   : > { %v1917_v12 = vmul.f32 %v1909_v63, %v4767_v49  ;;  %v2082_v44 = vmul.f32 %v4771_v6, %v4770_v22  ;;  %v2050_v35 = vmul.f32 %v4293_v54, %v4773_v50 }
 0x681   : > { %2188 = vmatpush.msra.mxu0 %v1948_v30  ;;  %2232 = vmatpush.msra.mxu1 %v1981_v16  ;;  %v2791_v30 = vld [vmem:[%s3249_s18 + $0x8] sm:$0xff]  ;;  %v4774_v16 = vld [vmem:[#allocation27_spill] sm:$0xff]  ;;  %s4605_s18 = scalar_lea.vmem [#allocation3], %s3865_s28  ;;  %s2631_s28 = sshll.u32 %s2974_s25, 5 }
 0x682   : > { %s2456_s1 = scalar_lea.hbm %s4666_s16, %s2631_s28  ;;  %s2457_s24 = sshll.u32 %s4605_s18, 4  ;;  %s2458_s24 = int_to_ptr.vmem [resolvable:$true] %s2457_s24 }
 0x683   : > { %2233 = vmatpush.msra.mxu1 %v1953_v52  ;;  %v2009_v52 = vsel %vm1123_vm12, %v4309_v26, %v4198_v0  ;;  %v1972_v0 = vsel %vm1102_vm14, %v4423_v17, %v4240_v48  ;;  %v4776_v26 = vld [vmem:[#allocation26_spill] sm:$0xff]  ;;  %s2459_s29 = sshll.u32 %s2456_s1, 4  ;;  %s2445_s25 = scalar_lea.sflag [#allocation4], %s516_s27  ;;  %s2460_s29 = int_to_ptr.hbm [resolvable:$true] %s2459_s29 }
 0x684   : > { %2611 = vmatmul.msk.f32.vlgmr.msra.gmra.mxu2 %vm755_vm0, %v4403_v13  ;;  %2613 = vmatmul.msk.f32.vlgmr.msra.gmra.mxu3 %vm755_vm0, %v4403_v13  ;;  %s2806_s30 = sshra.s32 %s2460_s29, 4  ;;  %s2807_s30 = int_to_ptr.hbm [resolvable:$true] %s2806_s30 }
 0x685   : > { %v4472_v61 = vpop.permute.xlu1 %1931  ;;  %v4474_v21 = vpop.permute.xlu0 %1901  ;;  %2397 = vmatpush.msra.mxu2 %v2789_v31  ;;  %2420 = vmatpush.msra.mxu3 %v2790_v7  ;;  %v4775_v31 = vld [vmem:[#allocation13_spill] sm:$0xff]  ;;  %s2808_s26 = scalar_lea.hbm %s2807_s30, 64  ;;  %p2813_p3 = scmp.lt.s32.totalorder %s2807_s30, %s4666_s16 }
 0x686   : > { %v1941_v39 = vsel %vm1081_vm13, %v1928_v57, %v4472_v61  ;;  %v4513_v38 = vpop.permute.xlu2 %1867  ;;  %v2316_v57 = vld [vmem:[%s4664_s14 + $0x8] sm:$0xff]  ;;  %v2014_v54 = vmul.f32 %v2009_v52, %v4775_v31  ;;  %v1939_v48 = vsel %vm1081_vm13, %v4472_v61, %v4138_v51  ;;  %v1907_v51 = vsel %vm1060_vm15, %v4482_v19, %v4136_v43  ;;  %p2809_p0 = scmp.ne.s32.totalorder %s2807_s30, %s2808_s26  ;;  %p2814_p4 = scmp.lt.s32.totalorder %s2812_s23, %s2808_s26 }
 0x687   : > { %v1949_v27 = vmul.f32 %v1941_v39, %v4765_v23  ;;  %v2046_v23 = vmul.f32 %v4774_v16, %v4773_v50  ;;  %v4777_v39 = vld [vmem:[#allocation19_spill] sm:$0xff] }
 0x688   : > { %v1986_v7 = vmul.f32 %v1972_v0, %v4777_v39  ;;  %p2810_p1 = pnand %p2809_p0, %p2992_p6  ;;  %p2815_p5 = por %p2814_p4, %p2813_p3 }
 0x689   : > { %2234 = vmatpush.msra.mxu1 %v1949_v27  ;;  %v4778_v27 = vld [vmem:[#allocation25_spill] sm:$0xff] }
 0x68a   : > { %p2811_p2 = pneg %p2810_p1 }
 0x68c   : > { %2612 = vmatmul.msk.f32.gmra.mxu2 %vm755_vm0, %v4448_v53  ;;  %2614 = vmatmul.msk.f32.gmra.mxu3 %vm755_vm0, %v4448_v53  ;;  %p2816_p7 = pnand %p2815_p5, %p2811_p2 }
 0x68d   : > { %v1866_v29 = vpop.permute.xlu1 %1865  ;;  %v1898_v15 = vpop.permute.xlu0 %1897 }
 0x68e   : > { %v1910_v42 = vsel %vm1060_vm15, %v1898_v15, %v4474_v21  ;;  %v1912_v33 = vsel %vm1060_vm15, %v4333_v41, %v1898_v15  ;;  %v1880_v5 = vsel %vm1039_vm2, %v4269_v14, %v1866_v29  ;;  %v4768_v41 = vld [vmem:[#allocation20_spill] sm:$0xff] }
 0x68f   : > { %v1920_v9 = vmul.f32 %v1912_v33, %v4766_v40  ;;  %v1921_v3 = vmul.f32 %v1910_v42, %v4767_v49  ;;  %v1888_v55 = vmul.f32 %v1880_v5, %v4768_v41 }
 0x691   : > { %2189 = vmatpush.msra.mxu0 %v1920_v9  ;;  %2235 = vmatpush.msra.mxu1 %v1921_v3 }
 0x693   : > { %2190 = vmatpush.msra.mxu0 %v1916_v32  ;;  %2236 = vmatpush.msra.mxu1 %v1917_v12  ;;  %v2322_v12 = vpop.permute.xlu2 %2321 }
 0x694   : > { %2615 = vmatmul.msk.f32.vlgmr.msrb.gmra.mxu2 %vm755_vm0, %v4403_v13  ;;  %2617 = vmatmul.msk.f32.vlgmr.msrb.gmra.mxu3 %vm2329_vm9, %v2315_v4 }
 0x695   : > { %v1870_v14 = vpop.permute.xlu1 %1869  ;;  %v1864_v45 = vpop.permute.xlu0 %1863  ;;  %2191 = vmatpush.msra.mxu0 %v1888_v55 }
 0x696   : > { %v1878_v2 = vsel %vm1039_vm2, %v1866_v29, %v1870_v14  ;;  %v1877_v56 = vsel %vm1039_vm2, %v1864_v45, %v4513_v38  ;;  %v1879_v62 = vsel %vm1039_vm2, %v4220_v10, %v1864_v45  ;;  %v4772_v10 = vld [vmem:[#allocation28_spill] sm:$0xff]  ;;  %v1940_v29 = vsel %vm1081_vm13, %v4295_v47, %v4212_v34 }
 0x697   : > { %v1889_v1 = vmul.f32 %v1878_v2, %v4769_v58  ;;  %v1884_v13 = vmul.f32 %v1879_v62, %v4768_v41  ;;  %v1885_v37 = vmul.f32 %v1877_v56, %v4769_v58  ;;  %v2078_v18 = vmul.f32 %v4772_v10, %v4770_v22 }
 0x698   : > { %v1908_v34 = vsel %vm1060_vm15, %v4474_v21, %v4202_v59  ;;  %v1876_v46 = vsel %vm1039_vm2, %v1870_v14, %v4244_v8  ;;  %v1875_v59 = vsel %vm1039_vm2, %v4513_v38, %v4150_v28  ;;  %v4781_v21 = vld [vmem:[#allocation24_spill] sm:$0xff] }
 0x699   : > { %2192 = vmatpush.msra.mxu0 %v1884_v13  ;;  %2237 = vmatpush.msra.mxu1 %v1889_v1  ;;  %v1890_v42 = vmul.f32 %v1876_v46, %v4781_v21  ;;  %v1886_v43 = vmul.f32 %v1875_v59, %v4781_v21 }
 0x69a   : > { %2193 = vmatmul.f32.vlgmr.msra.gmra.mxu0 %v4394_v20 }
 0x69b   : > { %2269 = vmatpush.msrb.mxu0 %v2082_v44  ;;  %2238 = vmatpush.msra.mxu1 %v1885_v37 }
 0x69c   : > { %2239 = vmatmul.f32.vlgmr.msra.gmra.mxu1 %v4394_v20  ;;  %2616 = vmatmul.msk.f32.gmra.mxu2 %vm755_vm0, %v4448_v53  ;;  %v2018_v53 = vmul.f32 %v4287_v25, %v4775_v31  ;;  %v1971_v25 = vsel %vm1102_vm14, %v4454_v11, %v4112_v60  ;;  %v4779_v60 = vld [vmem:[#allocation22_spill] sm:$0xff]  ;;  %v4780_v11 = vld [vmem:[#allocation23_spill] sm:$0xff] }
 0x69d   : > { %2270 = vmatpush.msrb.mxu0 %v2078_v18  ;;  %2618 = vmatmul.msk.f32.gmra.mxu3 %vm2329_vm9, %v2316_v57  ;;  %v1982_v15 = vmul.f32 %v1971_v25, %v4777_v39  ;;  %v1954_v17 = vmul.f32 %v1940_v29, %v4779_v60  ;;  %v1950_v47 = vmul.f32 %v1939_v48, %v4779_v60  ;;  %v2118_v3 = vpop.permute.xlu0 %2117  ;;  %v2123_v14 = vpop.permute.xlu1 %2122 }
 0x69e   : > { %2374 = vmatpush.msrb.mxu1 %v2791_v30  ;;  %v1922_v61 = vmul.f32 %v1908_v34, %v4780_v11  ;;  %v1918_v63 = vmul.f32 %v1907_v51, %v4780_v11 }
 0x69f   : > { %2271 = vmatpush.msrb.mxu0 %v2050_v35 }
 0x6a1   : > { %2272 = vmatpush.msrb.mxu0 %v2046_v23 }
 0x6a2   : > { %2196 = vmatmul.f32.gmra.mxu0 %v4443_v24 }
 0x6a3   : > { %2273 = vmatpush.msrb.mxu0 %v2018_v53 }
 0x6a4   : > { %2242 = vmatmul.f32.gmra.mxu1 %v4443_v24  ;;  %2621 = vmatmul.msk.f32.vlgmr.msra.gmra.mxu2 %vm2329_vm9, %v2315_v4 }
 0x6a5   : > { %2274 = vmatpush.msrb.mxu0 %v2014_v54  ;;  %2623 = vmatmul.msk.f32.vlgmr.msra.gmra.mxu3 %vm2329_vm9, %v2315_v4  ;;  %v2327_v2 = vpop.permute.xlu0 %2326 }
 0x6a7   : > { %2275 = vmatpush.msrb.mxu0 %v4776_v26 }
 0x6a9   : > { %2276 = vmatpush.msrb.mxu0 %v4778_v27 }
 0x6ab   : > { %2277 = vmatpush.msrb.mxu0 %v1986_v7 }
 0x6ac   : > { %2619 = vmatmul.msk.f32.vlgmr.msrb.gmra.mxu1 %vm2329_vm9, %v2315_v4  ;;  %2622 = vmatmul.msk.f32.gmra.mxu2 %vm2329_vm9, %v2316_v57 }
 0x6ad   : > { %2278 = vmatpush.msrb.mxu0 %v1982_v15  ;;  %2624 = vmatmul.msk.f32.gmra.mxu3 %vm2329_vm9, %v2316_v57 }
 0x6af   : > { %2279 = vmatpush.msrb.mxu0 %v1954_v17 }
 0x6b1   : > { %2280 = vmatpush.msrb.mxu0 %v1950_v47 }
 0x6b3   : > { %2281 = vmatpush.msrb.mxu0 %v1922_v61 }
 0x6b4   : > { %2620 = vmatmul.msk.f32.gmra.mxu1 %vm2329_vm9, %v2316_v57 }
 0x6b5   : > { %2282 = vmatpush.msrb.mxu0 %v1918_v63 }
 0x6b7   : > { %2283 = vmatpush.msrb.mxu0 %v1890_v42 }
 0x6b9   : > { %2284 = vmatpush.msrb.mxu0 %v1886_v43 }
 0x6ba   : > { %2285 = vmatmul.f32.vlgmr.msrb.gmra.mxu0 %v4394_v20 }
 0x6c2   : > { %2288 = vmatmul.f32.gmra.mxu0 %v4443_v24 }
 0x6f7   : > { %v2148_v8 = vpop.f32.mrf.mxu2  ;;  %v2171_v19 = vpop.f32.mrf.mxu3 }
 0x6f8   : > { %v2149_v5 = vadd.f32 %v2148_v8, %v2118_v3 }
 0x6fa   : > { %v2172_v41 = vadd.f32 %v2171_v19, %v2149_v5 }
 0x6ff   : > { %v2151_v33 = vpop.f32.mrf.mxu2  ;;  %v2174_v40 = vpop.f32.mrf.mxu3 }
 0x700   : > { %v2152_v24 = vadd.f32 %v2151_v33, %v2123_v14 }
 0x702   : > { %v2175_v62 = vadd.f32 %v2174_v40, %v2152_v24 }
 0x707   : > { %v2217_v36 = vpop.f32.mrf.mxu2  ;;  %v2263_v28 = vpop.f32.mrf.mxu3 }
 0x70f   : > { %v2220_v9 = vpop.f32.mrf.mxu2  ;;  %v2266_v49 = vpop.f32.mrf.mxu3 }
 0x717   : > { %v2309_v32 = vpop.f32.mrf.mxu2  ;;  %v2353_v4 = vpop.f32.mrf.mxu3 }
 0x718   : > { %v2354_v55 = vadd.f32 %v2353_v4, %v2322_v12  ;;  %v2194_v58 = vpop.f32.mrf.mxu0 }
 0x719   : > { %v2240_v38 = vpop.f32.mrf.mxu1  ;;  %v2195_v44 = vadd.f32 %v2194_v58, %v2118_v3 }
 0x71a   : > { %v2428_v20 = vadd.f32 %v2354_v55, %v2172_v41  ;;  %v2241_v6 = vadd.f32 %v2240_v38, %v2118_v3 }
 0x71b   : > { %v2218_v50 = vadd.f32 %v2217_v36, %v2195_v44 }
 0x71c   : > { %2436 = vst [vmem:[%s4605_s18] sm:$0xff] %v2428_v20  ;;  %v2264_v57 = vadd.f32 %v2263_v28, %v2241_v6 }
 0x71f   : > { %v2312_v45 = vpop.f32.mrf.mxu2 }
 0x720   : > { %v2356_v56 = vpop.f32.mrf.mxu3  ;;  %v2197_v16 = vpop.f32.mrf.mxu0 }
 0x721   : > { %v2357_v1 = vadd.f32 %v2356_v56, %v2327_v2  ;;  %v2243_v13 = vpop.f32.mrf.mxu1  ;;  %v2198_v31 = vadd.f32 %v2197_v16, %v2123_v14 }
 0x722   : > { %v2244_v23 = vadd.f32 %v2243_v13, %v2123_v14 }
 0x723   : > { %v2432_v22 = vadd.f32 %v2357_v1, %v2175_v62  ;;  %v2221_v25 = vadd.f32 %v2220_v9, %v2198_v31 }
 0x724   : > { %v2267_v54 = vadd.f32 %v2266_v49, %v2244_v23 }
 0x725   : > { %2440 = vst [vmem:[%s4605_s18 + $0x20] sm:$0xff] %v2432_v22 }
 0x727   : > { %v2399_v37 = vpop.f32.mrf.mxu2 }
 0x728   : > { %v2400_v10 = vadd.f32 %v2399_v37, %v2322_v12  ;;  %v2422_v29 = vpop.f32.mrf.mxu3 }
 0x729   : > { %v2376_v18 = vpop.f32.mrf.mxu1  ;;  %v2423_v60 = vadd.f32 %v2422_v29, %v2322_v12 }
 0x72a   : > { %v2430_v35 = vadd.f32 %v2400_v10, %v2264_v57  ;;  %v2377_v30 = vadd.f32 %v2376_v18, %v2322_v12 }
 0x72c   : > { %2438 = vst [vmem:[%s4605_s18 + $0x10] sm:$0xff] %v2430_v35  ;;  %v2429_v52 = vadd.f32 %v2377_v30, %v2218_v50 }
 0x72e   : > { %2437 = vst [vmem:[%s4605_s18 + $0x8] sm:$0xff] %v2429_v52 }
 0x72f   : > { %v2402_v53 = vpop.f32.mrf.mxu2 }
 0x730   : > { %v2403_v0 = vadd.f32 %v2402_v53, %v2327_v2  ;;  %v2425_v47 = vpop.f32.mrf.mxu3 }
 0x731   : > { %v2379_v26 = vpop.f32.mrf.mxu1  ;;  %v2426_v61 = vadd.f32 %v2425_v47, %v2327_v2 }
 0x732   : > { %v2434_v39 = vadd.f32 %v2403_v0, %v2267_v54  ;;  %v2380_v7 = vadd.f32 %v2379_v26, %v2327_v2 }
 0x734   : > { %2442 = vst [vmem:[%s4605_s18 + $0x30] sm:$0xff] %v2434_v39  ;;  %v2433_v27 = vadd.f32 %v2380_v7, %v2221_v25 }
 0x736   : > { %2441 = vst [vmem:[%s4605_s18 + $0x28] sm:$0xff] %v2433_v27 }
 0x737   : > { %v2286_v15 = vpop.f32.mrf.mxu0 }
 0x738   : > { %v2287_v48 = vadd.f32 %v2286_v15, %v2118_v3 }
 0x73a   : > { %v2310_v17 = vadd.f32 %v2309_v32, %v2287_v48 }
 0x73c   : > { %v2431_v34 = vadd.f32 %v2423_v60, %v2310_v17 }
 0x73e   : > { %2439 = vst [vmem:[%s4605_s18 + $0x18] sm:$0xff] %v2431_v34 }
 0x73f   : > { %v2289_v51 = vpop.f32.mrf.mxu0 }
 0x740   : > { %v2290_v11 = vadd.f32 %v2289_v51, %v2123_v14 }
 0x742   : > { %v2313_v46 = vadd.f32 %v2312_v45, %v2290_v11 }
 0x744   : > { %v2435_v63 = vadd.f32 %v2426_v61, %v2313_v46 }
 0x746   : > { %2443 = vst [vmem:[%s4605_s18 + $0x38] sm:$0xff] %v2435_v63 }
 0x747   : > { %2819 = shalt.err (!%p2816_p7)
}
 0x748   : > { %s2865_s27 = smov 512   ;;  %s2866_s18 = smov 1024  }
 0x749   : > { %s2867_s2 = smov 32  }
 0x74a   : > { %2632 = dma.vmem_to_hbm [thread:$0]  (%p2992_p6), %s2458_s24, 1024, %s2460_s29, %s2445_s25, %s2865_s27, %s2866_s18, %s2867_s2  }
 0x74b PF: > { %s2474_s19 = sand.u32 1, %s2842_s21   ;;  %p2635_p10 = pnand %p2542_p9, %p2996_p8 }
 0x74c   : > { %s2475_s30 = scalar_lea.sflag [#allocation4], %s2474_s19 }
 0x74d   : > { %p2636_p11 = pneg %p2635_p10 }
 0x74f   : > { %2837 = dma.done.wait (%p2636_p11), %s2475_s30, 1024  }
 0x750   : > { %2839 = vsyncadd (%p2636_p11), %s2475_s30, 4294966272  ;;  %s4783_s24 = sld [smem:[#allocation8_spill]]  ;;  %s4786_s21 = smov %s2846_s22 }
 0x751   : > { %s4784_s26 = sld [smem:[#allocation6_spill]] }
 0x752   : > { %s4785_s23 = sld [smem:[#allocation9_spill]] }
 0x756   : > { %p26_p12 = scmp.ge.s32.totalorder %s4783_s24, 4  }
 0x757   : > { %s4787_s22 = smov %s4784_s26 }
 0x758   :  { %28 = sbr.rel (!%p26_p12) target bundleno = 8 (0x8), region = 150 }
 0x75d   :  { %2481 = vsyncpa [#allocation4], 1 }
 0x75e   :  { %2483 = vsyncpa [#allocation4 + $0x1], 1 }

</bundles_post_ra>
